<compile_context>
chip_gen: v6e
topology: v6e:2x2x1
jax: 0.10.0
libtpu: 0.0.40
codegen_flags: <defaults>
</compile_context>

<pallas_src>
import functools
import math

import jax
import jax.numpy as jnp
from jax import lax
from jax.experimental import pallas as pl
from jax.experimental.pallas import tpu as pltpu

# Set to jnp.bfloat16 on v6e/v7x for ~2x MXU throughput and half the weight
# DMA bytes (f32 accumulation is kept). Default f32 to match module numerics.
MATMUL_DTYPE = jnp.float32
LN_EPS = 1e-6
NEG_INF = -1e9


# --------------------------------------------------------------------------
# In-kernel helpers (operate on VMEM-resident f32 values)
# --------------------------------------------------------------------------
def _dot(a, b):
    return jnp.dot(a.astype(MATMUL_DTYPE), b.astype(MATMUL_DTYPE),
                   preferred_element_type=jnp.float32)


def _layer_norm_f32(x, a, b, eps=LN_EPS):
    # PyTorch-style (Annotated Transformer): unbiased std, divide by (std+eps)
    mean = jnp.mean(x, axis=-1, keepdims=True)
    diff = x - mean
    var = jnp.sum(diff * diff, axis=-1, keepdims=True) / (x.shape[-1] - 1)
    return a * diff / (jnp.sqrt(var) + eps) + b


def _mha_f32(q, k, v, mask, *, num_heads, scale):
    """q:(Sq,D), k/v:(Sk,D), mask:(Sq,Sk) -> ctx:(Sq,D); all resident in VMEM."""
    _, d = q.shape
    dk = d // num_heads
    ctx_parts = []
    for h in range(num_heads):          # static unroll; no XLA head transposes
        lo, hi = h * dk, (h + 1) * dk
        qs, ks, vs = q[:, lo:hi], k[:, lo:hi], v[:, lo:hi]
        s = lax.dot_general(qs.astype(MATMUL_DTYPE), ks.astype(MATMUL_DTYPE),
                            (((1,), (1,)), ((), ())),
                            preferred_element_type=jnp.float32) * scale
        s = jnp.where(mask > 0, s, NEG_INF)
        s = s - jnp.max(s, axis=-1, keepdims=True)
        p = jnp.exp(s)
        p = p * pl.reciprocal(jnp.sum(p, axis=-1, keepdims=True), approx=True)
        ctx_parts.append(_dot(p, vs))
    return jnp.concatenate(ctx_parts, axis=-1)      # (Sq, D), lane-dense


# --------------------------------------------------------------------------
# Fused sublayer kernels (one batch element per grid step)
# --------------------------------------------------------------------------
def _self_attn_kernel(x_ref, mask_ref, a_ref, b_ref, wqkv_ref, bqkv_ref,
                      wo_ref, bo_ref, o_ref, *, num_heads, scale):
    x = x_ref[0].astype(jnp.float32)                         # (S, D)
    d = x.shape[-1]
    y = _layer_norm_f32(x, a_ref[...], b_ref[...])
    qkv = _dot(y, wqkv_ref[...]) + bqkv_ref[...]             # (S, 3D)
    q, k, v = qkv[:, :d], qkv[:, d:2 * d], qkv[:, 2 * d:]
    ctx = _mha_f32(q, k, v, mask_ref[0], num_heads=num_heads, scale=scale)
    out = x + _dot(ctx, wo_ref[...]) + bo_ref[...]           # residual fused
    o_ref[0] = out.astype(o_ref.dtype)


def _cross_attn_kernel(x_ref, mem_ref, mask_ref, a_ref, b_ref, wq_ref, bq_ref,
                       wkv_ref, bkv_ref, wo_ref, bo_ref, o_ref,
                       *, num_heads, scale):
    x = x_ref[0].astype(jnp.float32)                         # (S, D)
    mem = mem_ref[0].astype(jnp.float32)                     # (M, D)
    d = x.shape[-1]
    y = _layer_norm_f32(x, a_ref[...], b_ref[...])
    q = _dot(y, wq_ref[...]) + bq_ref[...]                   # (S, D)
    kv = _dot(mem, wkv_ref[...]) + bkv_ref[...]              # (M, 2D)
    k, v = kv[:, :d], kv[:, d:]
    ctx = _mha_f32(q, k, v, mask_ref[0], num_heads=num_heads, scale=scale)
    out = x + _dot(ctx, wo_ref[...]) + bo_ref[...]
    o_ref[0] = out.astype(o_ref.dtype)


def _ffn_kernel(x_ref, a_ref, b_ref, w1_ref, b1_ref, w2_ref, b2_ref, o_ref):
    x = x_ref[0].astype(jnp.float32)                         # (S, D)
    y = _layer_norm_f32(x, a_ref[...], b_ref[...])
    h = jnp.maximum(_dot(y, w1_ref[...]) + b1_ref[...], 0.0)
    out = x + _dot(h, w2_ref[...]) + b2_ref[...]
    o_ref[0] = out.astype(o_ref.dtype)


# --------------------------------------------------------------------------
# pallas_call wrappers (grid over batch, lane-dense blocks)
# --------------------------------------------------------------------------
def _rep2(shape):
    # replicated (weight/bias/LN) spec: same block for every grid step
    return pl.BlockSpec(shape, lambda i: (0, 0))


_PARALLEL = pltpu.CompilerParams(dimension_semantics=("parallel",))


def self_attn_sublayer(x, mask, ln_a, ln_b, p, *, num_heads):
    b, s, d = x.shape
    sk = mask.shape[-1]
    wqkv = jnp.concatenate([p["wq"], p["wk"], p["wv"]], axis=1)          # (D,3D)
    bqkv = jnp.concatenate([p["bq"], p["bk"], p["bv"]]).reshape(1, 3 * d)
    kernel = functools.partial(_self_attn_kernel, num_heads=num_heads,
                               scale=1.0 / math.sqrt(d // num_heads))
    return pl.pallas_call(
        kernel,
        out_shape=jax.ShapeDtypeStruct((b, s, d), x.dtype),
        grid=(b,),
        in_specs=[
            pl.BlockSpec((1, s, d), lambda i: (i, 0, 0)),
            pl.BlockSpec((1, s, sk), lambda i: (i, 0, 0)),
            _rep2((1, d)), _rep2((1, d)),
            _rep2((d, 3 * d)), _rep2((1, 3 * d)),
            _rep2((d, d)), _rep2((1, d)),
        ],
        out_specs=pl.BlockSpec((1, s, d), lambda i: (i, 0, 0)),
        input_output_aliases={0: 0},
        compiler_params=_PARALLEL,
    )(x, mask, ln_a.reshape(1, d), ln_b.reshape(1, d), wqkv, bqkv,
      p["wo"], p["bo"].reshape(1, d))


def cross_attn_sublayer(x, memory, mask, ln_a, ln_b, p, *, num_heads):
    b, s, d = x.shape
    m = memory.shape[1]
    wkv = jnp.concatenate([p["wk"], p["wv"]], axis=1)                    # (D,2D)
    bkv = jnp.concatenate([p["bk"], p["bv"]]).reshape(1, 2 * d)
    kernel = functools.partial(_cross_attn_kernel, num_heads=num_heads,
                               scale=1.0 / math.sqrt(d // num_heads))
    return pl.pallas_call(
        kernel,
        out_shape=jax.ShapeDtypeStruct((b, s, d), x.dtype),
        grid=(b,),
        in_specs=[
            pl.BlockSpec((1, s, d), lambda i: (i, 0, 0)),
            pl.BlockSpec((1, m, d), lambda i: (i, 0, 0)),
            pl.BlockSpec((1, s, m), lambda i: (i, 0, 0)),
            _rep2((1, d)), _rep2((1, d)),
            _rep2((d, d)), _rep2((1, d)),
            _rep2((d, 2 * d)), _rep2((1, 2 * d)),
            _rep2((d, d)), _rep2((1, d)),
        ],
        out_specs=pl.BlockSpec((1, s, d), lambda i: (i, 0, 0)),
        input_output_aliases={0: 0},
        compiler_params=_PARALLEL,
    )(x, memory, mask, ln_a.reshape(1, d), ln_b.reshape(1, d),
      p["wq"], p["bq"].reshape(1, d), wkv, bkv, p["wo"], p["bo"].reshape(1, d))


def ffn_sublayer(x, ln_a, ln_b, p):
    b, s, d = x.shape
    dff = p["w1"].shape[1]
    return pl.pallas_call(
        _ffn_kernel,
        out_shape=jax.ShapeDtypeStruct((b, s, d), x.dtype),
        grid=(b,),
        in_specs=[
            pl.BlockSpec((1, s, d), lambda i: (i, 0, 0)),
            _rep2((1, d)), _rep2((1, d)),
            _rep2((d, dff)), _rep2((1, dff)),
            _rep2((dff, d)), _rep2((1, d)),
        ],
        out_specs=pl.BlockSpec((1, s, d), lambda i: (i, 0, 0)),
        input_output_aliases={0: 0},
        compiler_params=_PARALLEL,
    )(x, ln_a.reshape(1, d), ln_b.reshape(1, d),
      p["w1"], p["b1"].reshape(1, dff), p["w2"], p["b2"].reshape(1, d))


# --------------------------------------------------------------------------
# DecoderLayer forward (3 fused pallas_calls total)
# --------------------------------------------------------------------------
def decoder_layer_forward(x, memory, src_mask, tgt_mask, params, *, num_heads):
    # TODO(synk): nn.Dropout is treated as identity (eval/inference semantics).
    x = self_attn_sublayer(x, tgt_mask, params["ln0_a"], params["ln0_b"],
                           params["self_attn"], num_heads=num_heads)
    x = cross_attn_sublayer(x, memory, src_mask, params["ln1_a"],
                            params["ln1_b"], params["src_attn"],
                            num_heads=num_heads)
    x = ffn_sublayer(x, params["ln2_a"], params["ln2_b"], params["ffn"])
    return x


# --------------------------------------------------------------------------
# Pure-JAX reference (mirrors the PyTorch module)
# --------------------------------------------------------------------------
def _ref_layer_norm(x, a, b, eps=1e-6):
    mean = jnp.mean(x, -1, keepdims=True)
    var = jnp.sum((x - mean) ** 2, -1, keepdims=True) / (x.shape[-1] - 1)
    std = jnp.sqrt(var)
    return a * (x - mean) / (std + eps) + b


def _ref_mha(q_in, k_in, v_in, mask, p, batch, num_heads):
    HI = lax.Precision.HIGHEST
    d = q_in.shape[-1]
    dk = d // num_heads
    sq, sk = q_in.shape[0] // batch, k_in.shape[0] // batch

    def lin(x, w, bb):
        return jnp.dot(x, w, precision=HI) + bb

    q = lin(q_in, p["wq"], p["bq"]).reshape(batch, sq, num_heads, dk).transpose(0, 2, 1, 3)
    k = lin(k_in, p["wk"], p["bk"]).reshape(batch, sk, num_heads, dk).transpose(0, 2, 1, 3)
    v = lin(v_in, p["wv"], p["bv"]).reshape(batch, sk, num_heads, dk).transpose(0, 2, 1, 3)
    scores = jnp.einsum("bhqd,bhkd->bhqk", q, k, precision=HI) / math.sqrt(dk)
    scores = jnp.where(mask[:, None, :, :] > 0, scores, -1e9)
    attn = jax.nn.softmax(scores, axis=-1)
    ctx = jnp.einsum("bhqk,bhkd->bhqd", attn, v, precision=HI)
    ctx = ctx.transpose(0, 2, 1, 3).reshape(batch * sq, d)
    return lin(ctx, p["wo"], p["bo"])


def _ref_decoder_layer(x, memory, src_mask, tgt_mask, params, num_heads):
    HI = lax.Precision.HIGHEST
    b, s, d = x.shape
    m = memory.shape[1]
    x2 = x.reshape(b * s, d)
    mem2 = memory.reshape(b * m, d)

    y = _ref_layer_norm(x2, params["ln0_a"], params["ln0_b"])
    x2 = x2 + _ref_mha(y, y, y, tgt_mask, params["self_attn"], b, num_heads)

    y = _ref_layer_norm(x2, params["ln1_a"], params["ln1_b"])
    x2 = x2 + _ref_mha(y, mem2, mem2, src_mask, params["src_attn"], b, num_heads)

    y = _ref_layer_norm(x2, params["ln2_a"], params["ln2_b"])
    h = jnp.maximum(jnp.dot(y, params["ffn"]["w1"], precision=HI) + params["ffn"]["b1"], 0.0)
    x2 = x2 + jnp.dot(h, params["ffn"]["w2"], precision=HI) + params["ffn"]["b2"]
    return x2.reshape(b, s, d)


# --------------------------------------------------------------------------
if __name__ == "__main__":
    # Small shapes consistent with the module: batch=2, tgt seq=8, src seq=8,
    # d_model=128 (lane-dense), heads=4 (d_k=32), d_ff=256.
    B, S, M = 2, 8, 8
    D, H, D_FF = 128, 4, 256

    key = jax.random.PRNGKey(0)
    ks = jax.random.split(key, 16)

    def w(k, din, dout):
        return jax.random.normal(k, (din, dout), jnp.float32) / math.sqrt(din)

    def attn_params(k4):
        ka, kb, kc, kd = jax.random.split(k4, 4)
        return {
            "wq": w(ka, D, D), "bq": jnp.zeros((D,), jnp.float32),
            "wk": w(kb, D, D), "bk": jnp.zeros((D,), jnp.float32),
            "wv": w(kc, D, D), "bv": jnp.zeros((D,), jnp.float32),
            "wo": w(kd, D, D), "bo": jnp.zeros((D,), jnp.float32),
        }

    params = {
        "ln0_a": jnp.ones((D,), jnp.float32), "ln0_b": jnp.zeros((D,), jnp.float32),
        "ln1_a": jnp.ones((D,), jnp.float32), "ln1_b": jnp.zeros((D,), jnp.float32),
        "ln2_a": jnp.ones((D,), jnp.float32), "ln2_b": jnp.zeros((D,), jnp.float32),
        "self_attn": attn_params(ks[0]),
        "src_attn": attn_params(ks[1]),
        "ffn": {
            "w1": w(ks[2], D, D_FF), "b1": jnp.zeros((D_FF,), jnp.float32),
            "w2": w(ks[3], D_FF, D), "b2": jnp.zeros((D,), jnp.float32),
        },
    }

    x = jax.random.normal(ks[4], (B, S, D), jnp.float32)
    memory = jax.random.normal(ks[5], (B, M, D), jnp.float32)

    # tgt_mask: causal; src_mask: attend to all memory positions.
    tgt_mask = jnp.broadcast_to(jnp.tril(jnp.ones((S, S), jnp.float32)), (B, S, S))
    src_mask = jnp.ones((B, S, M), jnp.float32)

    fwd = jax.jit(functools.partial(decoder_layer_forward, num_heads=H))
    out = jax.block_until_ready(fwd(x, memory, src_mask, tgt_mask, params))

    ref = _ref_decoder_layer(x, memory, src_mask, tgt_mask, params, H)
    assert out.shape == (B, S, D)
    assert jnp.all(jnp.isfinite(out))
    # tolerance accounts for the EUP approximate reciprocal in the softmax
    assert jnp.allclose(out, ref, atol=5e-3, rtol=5e-3), (
        float(jnp.max(jnp.abs(out - ref))))

    print("KERNEL_OK")
</pallas_src>

<mosaic_0001>
module attributes {stable_mosaic.version = 11 : i64} {
  func.func @_self_attn_kernel(%arg0: i32, %arg1: memref<1x8x128xf32, #tpu.memory_space<vmem>>, %arg2: memref<1x8x8xf32, #tpu.memory_space<vmem>>, %arg3: memref<1x128xf32, #tpu.memory_space<vmem>>, %arg4: memref<1x128xf32, #tpu.memory_space<vmem>>, %arg5: memref<128x384xf32, #tpu.memory_space<vmem>>, %arg6: memref<1x384xf32, #tpu.memory_space<vmem>>, %arg7: memref<128x128xf32, #tpu.memory_space<vmem>>, %arg8: memref<1x128xf32, #tpu.memory_space<vmem>>, %arg9: memref<1x8x128xf32, #tpu.memory_space<vmem>>) attributes {dimension_semantics = [#tpu.dimension_semantics<parallel>], iteration_bounds = array<i64: 2>, scalar_prefetch = 0 : i64, scratch_operands = 0 : i64, tpu.core_type = #tpu.core_type<tc>, window_params = [{transform_indices = @transform_0, window_bounds = array<i64: 1, 8, 128>}, {transform_indices = @transform_1, window_bounds = array<i64: 1, 8, 8>}, {pipeline_mode = #tpu.pipeline_mode<synchronous>, transform_indices = @transform_2, window_bounds = array<i64: 1, 128>}, {pipeline_mode = #tpu.pipeline_mode<synchronous>, transform_indices = @transform_3, window_bounds = array<i64: 1, 128>}, {pipeline_mode = #tpu.pipeline_mode<synchronous>, transform_indices = @transform_4, window_bounds = array<i64: 128, 384>}, {pipeline_mode = #tpu.pipeline_mode<synchronous>, transform_indices = @transform_5, window_bounds = array<i64: 1, 384>}, {pipeline_mode = #tpu.pipeline_mode<synchronous>, transform_indices = @transform_6, window_bounds = array<i64: 128, 128>}, {pipeline_mode = #tpu.pipeline_mode<synchronous>, transform_indices = @transform_7, window_bounds = array<i64: 1, 128>}, {transform_indices = @transform_8, window_bounds = array<i64: 1, 8, 128>}]} {
    %c0 = arith.constant 0 : index
    %c0_0 = arith.constant 0 : index
    %c0_1 = arith.constant 0 : index
    %0 = vector.load %arg1[%c0, %c0_0, %c0_1] : memref<1x8x128xf32, #tpu.memory_space<vmem>>, vector<1x8x128xf32>
    %1 = vector.shape_cast %0 : vector<1x8x128xf32> to vector<8x128xf32>
    %c0_2 = arith.constant 0 : index
    %c0_3 = arith.constant 0 : index
    %2 = vector.load %arg3[%c0_2, %c0_3] : memref<1x128xf32, #tpu.memory_space<vmem>>, vector<1x128xf32>
    %c0_4 = arith.constant 0 : index
    %c0_5 = arith.constant 0 : index
    %3 = vector.load %arg4[%c0_4, %c0_5] : memref<1x128xf32, #tpu.memory_space<vmem>>, vector<1x128xf32>
    %cst = arith.constant dense<0.000000e+00> : vector<8xf32>
    %4 = vector.multi_reduction <add>, %1, %cst [1] : vector<8x128xf32> to vector<8xf32>
    %5 = vector.shape_cast %4 : vector<8xf32> to vector<8x1xf32>
    %cst_6 = arith.constant 1.280000e+02 : f32
    %6 = vector.broadcast %cst_6 : f32 to vector<8x1xf32>
    %7 = arith.divf %5, %6 : vector<8x1xf32>
    %8 = vector.broadcast %7 : vector<8x1xf32> to vector<8x128xf32>
    %9 = arith.subf %1, %8 : vector<8x128xf32>
    %10 = arith.mulf %9, %9 : vector<8x128xf32>
    %cst_7 = arith.constant dense<0.000000e+00> : vector<8xf32>
    %11 = vector.multi_reduction <add>, %10, %cst_7 [1] : vector<8x128xf32> to vector<8xf32>
    %12 = vector.shape_cast %11 : vector<8xf32> to vector<8x1xf32>
    %cst_8 = arith.constant 1.270000e+02 : f32
    %13 = vector.broadcast %cst_8 : f32 to vector<8x1xf32>
    %14 = arith.divf %12, %13 : vector<8x1xf32>
    %15 = vector.broadcast %2 : vector<1x128xf32> to vector<8x128xf32>
    %16 = arith.mulf %15, %9 : vector<8x128xf32>
    %17 = math.sqrt %14 : vector<8x1xf32>
    %cst_9 = arith.constant 9.99999997E-7 : f32
    %18 = vector.broadcast %cst_9 : f32 to vector<8x1xf32>
    %19 = arith.addf %17, %18 : vector<8x1xf32>
    %20 = vector.broadcast %19 : vector<8x1xf32> to vector<8x128xf32>
    %21 = arith.divf %16, %20 : vector<8x128xf32>
    %22 = vector.broadcast %3 : vector<1x128xf32> to vector<8x128xf32>
    %23 = arith.addf %21, %22 : vector<8x128xf32>
    %c0_10 = arith.constant 0 : index
    %c0_11 = arith.constant 0 : index
    %24 = vector.load %arg5[%c0_10, %c0_11] : memref<128x384xf32, #tpu.memory_space<vmem>>, vector<128x384xf32>
    %cst_12 = arith.constant dense<0.000000e+00> : vector<8x384xf32>
    %25 = tpu.matmul %23, %24, %cst_12 {dimension_numbers = #tpu.dot_dimension_numbers<[1], [0], [0], [1], [0, 0, 1, 1], [], []>} : vector<8x128xf32>, vector<128x384xf32>, vector<8x384xf32> -> vector<8x384xf32>
    %c0_13 = arith.constant 0 : index
    %c0_14 = arith.constant 0 : index
    %26 = vector.load %arg6[%c0_13, %c0_14] : memref<1x384xf32, #tpu.memory_space<vmem>>, vector<1x384xf32>
    %27 = vector.broadcast %26 : vector<1x384xf32> to vector<8x384xf32>
    %28 = arith.addf %25, %27 : vector<8x384xf32>
    %29 = vector.extract_strided_slice %28 {offsets = [0, 0], sizes = [8, 128], strides = [1, 1]} : vector<8x384xf32> to vector<8x128xf32>
    %30 = vector.extract_strided_slice %28 {offsets = [0, 128], sizes = [8, 128], strides = [1, 1]} : vector<8x384xf32> to vector<8x128xf32>
    %31 = vector.extract_strided_slice %28 {offsets = [0, 256], sizes = [8, 128], strides = [1, 1]} : vector<8x384xf32> to vector<8x128xf32>
    %c0_15 = arith.constant 0 : index
    %c0_16 = arith.constant 0 : index
    %c0_17 = arith.constant 0 : index
    %32 = vector.load %arg2[%c0_15, %c0_16, %c0_17] : memref<1x8x8xf32, #tpu.memory_space<vmem>>, vector<1x8x8xf32>
    %33 = vector.shape_cast %32 : vector<1x8x8xf32> to vector<8x8xf32>
    %34 = vector.extract_strided_slice %29 {offsets = [0, 0], sizes = [8, 32], strides = [1, 1]} : vector<8x128xf32> to vector<8x32xf32>
    %35 = vector.extract_strided_slice %30 {offsets = [0, 0], sizes = [8, 32], strides = [1, 1]} : vector<8x128xf32> to vector<8x32xf32>
    %36 = vector.extract_strided_slice %31 {offsets = [0, 0], sizes = [8, 32], strides = [1, 1]} : vector<8x128xf32> to vector<8x32xf32>
    %cst_18 = arith.constant dense<0.000000e+00> : vector<8x8xf32>
    %37 = tpu.matmul %34, %35, %cst_18 {dimension_numbers = #tpu.dot_dimension_numbers<[1], [1], [0], [0], [0, 0, 1, 0], [], []>} : vector<8x32xf32>, vector<8x32xf32>, vector<8x8xf32> -> vector<8x8xf32>
    %cst_19 = arith.constant 0.176776692 : f32
    %38 = vector.broadcast %cst_19 : f32 to vector<8x8xf32>
    %39 = arith.mulf %37, %38 : vector<8x8xf32>
    %cst_20 = arith.constant 0.000000e+00 : f32
    %40 = vector.broadcast %cst_20 : f32 to vector<8x8xf32>
    %41 = arith.cmpf ogt, %33, %40 : vector<8x8xf32>
    %cst_21 = arith.constant -1.000000e+09 : f32
    %42 = vector.broadcast %cst_21 : f32 to vector<8x8xf32>
    %43 = arith.select %41, %39, %42 : vector<8x8xi1>, vector<8x8xf32>
    %cst_22 = arith.constant dense<0xFF800000> : vector<8xf32>
    %44 = vector.multi_reduction <maximumf>, %43, %cst_22 [1] : vector<8x8xf32> to vector<8xf32>
    %45 = vector.shape_cast %44 : vector<8xf32> to vector<8x1xf32>
    %46 = vector.broadcast %45 : vector<8x1xf32> to vector<8x8xf32>
    %47 = arith.subf %43, %46 : vector<8x8xf32>
    %48 = math.exp %47 : vector<8x8xf32>
    %cst_23 = arith.constant dense<0.000000e+00> : vector<8xf32>
    %49 = vector.multi_reduction <add>, %48, %cst_23 [1] : vector<8x8xf32> to vector<8xf32>
    %50 = vector.shape_cast %49 : vector<8xf32> to vector<8x1xf32>
    %51 = tpu.reciprocal %50 {approx = true} : vector<8x1xf32> -> vector<8x1xf32>
    %52 = vector.broadcast %51 : vector<8x1xf32> to vector<8x8xf32>
    %53 = arith.mulf %48, %52 : vector<8x8xf32>
    %cst_24 = arith.constant dense<0.000000e+00> : vector<8x32xf32>
    %54 = tpu.matmul %53, %36, %cst_24 {dimension_numbers = #tpu.dot_dimension_numbers<[1], [0], [0], [1], [0, 0, 1, 1], [], []>} : vector<8x8xf32>, vector<8x32xf32>, vector<8x32xf32> -> vector<8x32xf32>
    %55 = vector.extract_strided_slice %29 {offsets = [0, 32], sizes = [8, 32], strides = [1, 1]} : vector<8x128xf32> to vector<8x32xf32>
    %56 = vector.extract_strided_slice %30 {offsets = [0, 32], sizes = [8, 32], strides = [1, 1]} : vector<8x128xf32> to vector<8x32xf32>
    %57 = vector.extract_strided_slice %31 {offsets = [0, 32], sizes = [8, 32], strides = [1, 1]} : vector<8x128xf32> to vector<8x32xf32>
    %cst_25 = arith.constant dense<0.000000e+00> : vector<8x8xf32>
    %58 = tpu.matmul %55, %56, %cst_25 {dimension_numbers = #tpu.dot_dimension_numbers<[1], [1], [0], [0], [0, 0, 1, 0], [], []>} : vector<8x32xf32>, vector<8x32xf32>, vector<8x8xf32> -> vector<8x8xf32>
    %cst_26 = arith.constant 0.176776692 : f32
    %59 = vector.broadcast %cst_26 : f32 to vector<8x8xf32>
    %60 = arith.mulf %58, %59 : vector<8x8xf32>
    %cst_27 = arith.constant 0.000000e+00 : f32
    %61 = vector.broadcast %cst_27 : f32 to vector<8x8xf32>
    %62 = arith.cmpf ogt, %33, %61 : vector<8x8xf32>
    %cst_28 = arith.constant -1.000000e+09 : f32
    %63 = vector.broadcast %cst_28 : f32 to vector<8x8xf32>
    %64 = arith.select %62, %60, %63 : vector<8x8xi1>, vector<8x8xf32>
    %cst_29 = arith.constant dense<0xFF800000> : vector<8xf32>
    %65 = vector.multi_reduction <maximumf>, %64, %cst_29 [1] : vector<8x8xf32> to vector<8xf32>
    %66 = vector.shape_cast %65 : vector<8xf32> to vector<8x1xf32>
    %67 = vector.broadcast %66 : vector<8x1xf32> to vector<8x8xf32>
    %68 = arith.subf %64, %67 : vector<8x8xf32>
    %69 = math.exp %68 : vector<8x8xf32>
    %cst_30 = arith.constant dense<0.000000e+00> : vector<8xf32>
    %70 = vector.multi_reduction <add>, %69, %cst_30 [1] : vector<8x8xf32> to vector<8xf32>
    %71 = vector.shape_cast %70 : vector<8xf32> to vector<8x1xf32>
    %72 = tpu.reciprocal %71 {approx = true} : vector<8x1xf32> -> vector<8x1xf32>
    %73 = vector.broadcast %72 : vector<8x1xf32> to vector<8x8xf32>
    %74 = arith.mulf %69, %73 : vector<8x8xf32>
    %cst_31 = arith.constant dense<0.000000e+00> : vector<8x32xf32>
    %75 = tpu.matmul %74, %57, %cst_31 {dimension_numbers = #tpu.dot_dimension_numbers<[1], [0], [0], [1], [0, 0, 1, 1], [], []>} : vector<8x8xf32>, vector<8x32xf32>, vector<8x32xf32> -> vector<8x32xf32>
    %76 = vector.extract_strided_slice %29 {offsets = [0, 64], sizes = [8, 32], strides = [1, 1]} : vector<8x128xf32> to vector<8x32xf32>
    %77 = vector.extract_strided_slice %30 {offsets = [0, 64], sizes = [8, 32], strides = [1, 1]} : vector<8x128xf32> to vector<8x32xf32>
    %78 = vector.extract_strided_slice %31 {offsets = [0, 64], sizes = [8, 32], strides = [1, 1]} : vector<8x128xf32> to vector<8x32xf32>
    %cst_32 = arith.constant dense<0.000000e+00> : vector<8x8xf32>
    %79 = tpu.matmul %76, %77, %cst_32 {dimension_numbers = #tpu.dot_dimension_numbers<[1], [1], [0], [0], [0, 0, 1, 0], [], []>} : vector<8x32xf32>, vector<8x32xf32>, vector<8x8xf32> -> vector<8x8xf32>
    %cst_33 = arith.constant 0.176776692 : f32
    %80 = vector.broadcast %cst_33 : f32 to vector<8x8xf32>
    %81 = arith.mulf %79, %80 : vector<8x8xf32>
    %cst_34 = arith.constant 0.000000e+00 : f32
    %82 = vector.broadcast %cst_34 : f32 to vector<8x8xf32>
    %83 = arith.cmpf ogt, %33, %82 : vector<8x8xf32>
    %cst_35 = arith.constant -1.000000e+09 : f32
    %84 = vector.broadcast %cst_35 : f32 to vector<8x8xf32>
    %85 = arith.select %83, %81, %84 : vector<8x8xi1>, vector<8x8xf32>
    %cst_36 = arith.constant dense<0xFF800000> : vector<8xf32>
    %86 = vector.multi_reduction <maximumf>, %85, %cst_36 [1] : vector<8x8xf32> to vector<8xf32>
    %87 = vector.shape_cast %86 : vector<8xf32> to vector<8x1xf32>
    %88 = vector.broadcast %87 : vector<8x1xf32> to vector<8x8xf32>
    %89 = arith.subf %85, %88 : vector<8x8xf32>
    %90 = math.exp %89 : vector<8x8xf32>
    %cst_37 = arith.constant dense<0.000000e+00> : vector<8xf32>
    %91 = vector.multi_reduction <add>, %90, %cst_37 [1] : vector<8x8xf32> to vector<8xf32>
    %92 = vector.shape_cast %91 : vector<8xf32> to vector<8x1xf32>
    %93 = tpu.reciprocal %92 {approx = true} : vector<8x1xf32> -> vector<8x1xf32>
    %94 = vector.broadcast %93 : vector<8x1xf32> to vector<8x8xf32>
    %95 = arith.mulf %90, %94 : vector<8x8xf32>
    %cst_38 = arith.constant dense<0.000000e+00> : vector<8x32xf32>
    %96 = tpu.matmul %95, %78, %cst_38 {dimension_numbers = #tpu.dot_dimension_numbers<[1], [0], [0], [1], [0, 0, 1, 1], [], []>} : vector<8x8xf32>, vector<8x32xf32>, vector<8x32xf32> -> vector<8x32xf32>
    %97 = vector.extract_strided_slice %29 {offsets = [0, 96], sizes = [8, 32], strides = [1, 1]} : vector<8x128xf32> to vector<8x32xf32>
    %98 = vector.extract_strided_slice %30 {offsets = [0, 96], sizes = [8, 32], strides = [1, 1]} : vector<8x128xf32> to vector<8x32xf32>
    %99 = vector.extract_strided_slice %31 {offsets = [0, 96], sizes = [8, 32], strides = [1, 1]} : vector<8x128xf32> to vector<8x32xf32>
    %cst_39 = arith.constant dense<0.000000e+00> : vector<8x8xf32>
    %100 = tpu.matmul %97, %98, %cst_39 {dimension_numbers = #tpu.dot_dimension_numbers<[1], [1], [0], [0], [0, 0, 1, 0], [], []>} : vector<8x32xf32>, vector<8x32xf32>, vector<8x8xf32> -> vector<8x8xf32>
    %cst_40 = arith.constant 0.176776692 : f32
    %101 = vector.broadcast %cst_40 : f32 to vector<8x8xf32>
    %102 = arith.mulf %100, %101 : vector<8x8xf32>
    %cst_41 = arith.constant 0.000000e+00 : f32
    %103 = vector.broadcast %cst_41 : f32 to vector<8x8xf32>
    %104 = arith.cmpf ogt, %33, %103 : vector<8x8xf32>
    %cst_42 = arith.constant -1.000000e+09 : f32
    %105 = vector.broadcast %cst_42 : f32 to vector<8x8xf32>
    %106 = arith.select %104, %102, %105 : vector<8x8xi1>, vector<8x8xf32>
    %cst_43 = arith.constant dense<0xFF800000> : vector<8xf32>
    %107 = vector.multi_reduction <maximumf>, %106, %cst_43 [1] : vector<8x8xf32> to vector<8xf32>
    %108 = vector.shape_cast %107 : vector<8xf32> to vector<8x1xf32>
    %109 = vector.broadcast %108 : vector<8x1xf32> to vector<8x8xf32>
    %110 = arith.subf %106, %109 : vector<8x8xf32>
    %111 = math.exp %110 : vector<8x8xf32>
    %cst_44 = arith.constant dense<0.000000e+00> : vector<8xf32>
    %112 = vector.multi_reduction <add>, %111, %cst_44 [1] : vector<8x8xf32> to vector<8xf32>
    %113 = vector.shape_cast %112 : vector<8xf32> to vector<8x1xf32>
    %114 = tpu.reciprocal %113 {approx = true} : vector<8x1xf32> -> vector<8x1xf32>
    %115 = vector.broadcast %114 : vector<8x1xf32> to vector<8x8xf32>
    %116 = arith.mulf %111, %115 : vector<8x8xf32>
    %cst_45 = arith.constant dense<0.000000e+00> : vector<8x32xf32>
    %117 = tpu.matmul %116, %99, %cst_45 {dimension_numbers = #tpu.dot_dimension_numbers<[1], [0], [0], [1], [0, 0, 1, 1], [], []>} : vector<8x8xf32>, vector<8x32xf32>, vector<8x32xf32> -> vector<8x32xf32>
    %118 = tpu.concatenate %54, %75, %96, %117 in 1 : vector<8x32xf32>, vector<8x32xf32>, vector<8x32xf32>, vector<8x32xf32> -> vector<8x128xf32>
    %c0_46 = arith.constant 0 : index
    %c0_47 = arith.constant 0 : index
    %119 = vector.load %arg7[%c0_46, %c0_47] : memref<128x128xf32, #tpu.memory_space<vmem>>, vector<128x128xf32>
    %cst_48 = arith.constant dense<0.000000e+00> : vector<8x128xf32>
    %120 = tpu.matmul %118, %119, %cst_48 {dimension_numbers = #tpu.dot_dimension_numbers<[1], [0], [0], [1], [0, 0, 1, 1], [], []>} : vector<8x128xf32>, vector<128x128xf32>, vector<8x128xf32> -> vector<8x128xf32>
    %121 = arith.addf %1, %120 : vector<8x128xf32>
    %c0_49 = arith.constant 0 : index
    %c0_50 = arith.constant 0 : index
    %122 = vector.load %arg8[%c0_49, %c0_50] : memref<1x128xf32, #tpu.memory_space<vmem>>, vector<1x128xf32>
    %123 = vector.broadcast %122 : vector<1x128xf32> to vector<8x128xf32>
    %124 = arith.addf %121, %123 : vector<8x128xf32>
    %c0_51 = arith.constant 0 : index
    %c0_52 = arith.constant 0 : index
    %c0_53 = arith.constant 0 : index
    %125 = vector.load %arg9[%c0_51, %c0_52, %c0_53] : memref<1x8x128xf32, #tpu.memory_space<vmem>>, vector<1x8x128xf32>
    %126 = vector.shape_cast %125 : vector<1x8x128xf32> to vector<8x128xf32>
    %127 = vector.shape_cast %124 : vector<8x128xf32> to vector<1x8x128xf32>
    tpu.vector_store %arg9[%c0_51, %c0_52, %c0_53], %127 {strides = array<i32>} : memref<1x8x128xf32, #tpu.memory_space<vmem>>, vector<1x8x128xf32>,
    return
  }
  func.func @transform_0(%arg0: i32) -> (i32, i32, i32) {
    %c0_i32 = arith.constant 0 : i32
    %c0_i32_0 = arith.constant 0 : i32
    %c0_i32_1 = arith.constant 0 : i32
    return %arg0, %c0_i32, %c0_i32_0 : i32, i32, i32
  }
  func.func @transform_1(%arg0: i32) -> (i32, i32, i32) {
    %c0_i32 = arith.constant 0 : i32
    %c0_i32_0 = arith.constant 0 : i32
    %c0_i32_1 = arith.constant 0 : i32
    return %arg0, %c0_i32, %c0_i32_0 : i32, i32, i32
  }
  func.func @transform_2(%arg0: i32) -> (i32, i32) {
    %c0_i32 = arith.constant 0 : i32
    %c0_i32_0 = arith.constant 0 : i32
    %c0_i32_1 = arith.constant 0 : i32
    return %c0_i32, %c0_i32_0 : i32, i32
  }
  func.func @transform_3(%arg0: i32) -> (i32, i32) {
    %c0_i32 = arith.constant 0 : i32
    %c0_i32_0 = arith.constant 0 : i32
    %c0_i32_1 = arith.constant 0 : i32
    return %c0_i32, %c0_i32_0 : i32, i32
  }
  func.func @transform_4(%arg0: i32) -> (i32, i32) {
    %c0_i32 = arith.constant 0 : i32
    %c0_i32_0 = arith.constant 0 : i32
    %c0_i32_1 = arith.constant 0 : i32
    return %c0_i32, %c0_i32_0 : i32, i32
  }
  func.func @transform_5(%arg0: i32) -> (i32, i32) {
    %c0_i32 = arith.constant 0 : i32
    %c0_i32_0 = arith.constant 0 : i32
    %c0_i32_1 = arith.constant 0 : i32
    return %c0_i32, %c0_i32_0 : i32, i32
  }
  func.func @transform_6(%arg0: i32) -> (i32, i32) {
    %c0_i32 = arith.constant 0 : i32
    %c0_i32_0 = arith.constant 0 : i32
    %c0_i32_1 = arith.constant 0 : i32
    return %c0_i32, %c0_i32_0 : i32, i32
  }
  func.func @transform_7(%arg0: i32) -> (i32, i32) {
    %c0_i32 = arith.constant 0 : i32
    %c0_i32_0 = arith.constant 0 : i32
    %c0_i32_1 = arith.constant 0 : i32
    return %c0_i32, %c0_i32_0 : i32, i32
  }
  func.func @transform_8(%arg0: i32) -> (i32, i32, i32) {
    %c0_i32 = arith.constant 0 : i32
    %c0_i32_0 = arith.constant 0 : i32
    %c0_i32_1 = arith.constant 0 : i32
    return %arg0, %c0_i32, %c0_i32_0 : i32, i32, i32
  }
}

module attributes {stable_mosaic.version = 11 : i64} {
  func.func @_cross_attn_kernel(%arg0: i32, %arg1: memref<1x8x128xf32, #tpu.memory_space<vmem>>, %arg2: memref<1x8x128xf32, #tpu.memory_space<vmem>>, %arg3: memref<1x8x8xf32, #tpu.memory_space<vmem>>, %arg4: memref<1x128xf32, #tpu.memory_space<vmem>>, %arg5: memref<1x128xf32, #tpu.memory_space<vmem>>, %arg6: memref<128x128xf32, #tpu.memory_space<vmem>>, %arg7: memref<1x128xf32, #tpu.memory_space<vmem>>, %arg8: memref<128x256xf32, #tpu.memory_space<vmem>>, %arg9: memref<1x256xf32, #tpu.memory_space<vmem>>, %arg10: memref<128x128xf32, #tpu.memory_space<vmem>>, %arg11: memref<1x128xf32, #tpu.memory_space<vmem>>, %arg12: memref<1x8x128xf32, #tpu.memory_space<vmem>>) attributes {dimension_semantics = [#tpu.dimension_semantics<parallel>], iteration_bounds = array<i64: 2>, scalar_prefetch = 0 : i64, scratch_operands = 0 : i64, tpu.core_type = #tpu.core_type<tc>, window_params = [{transform_indices = @transform_0, window_bounds = array<i64: 1, 8, 128>}, {transform_indices = @transform_1, window_bounds = array<i64: 1, 8, 128>}, {transform_indices = @transform_2, window_bounds = array<i64: 1, 8, 8>}, {pipeline_mode = #tpu.pipeline_mode<synchronous>, transform_indices = @transform_3, window_bounds = array<i64: 1, 128>}, {pipeline_mode = #tpu.pipeline_mode<synchronous>, transform_indices = @transform_4, window_bounds = array<i64: 1, 128>}, {pipeline_mode = #tpu.pipeline_mode<synchronous>, transform_indices = @transform_5, window_bounds = array<i64: 128, 128>}, {pipeline_mode = #tpu.pipeline_mode<synchronous>, transform_indices = @transform_6, window_bounds = array<i64: 1, 128>}, {pipeline_mode = #tpu.pipeline_mode<synchronous>, transform_indices = @transform_7, window_bounds = array<i64: 128, 256>}, {pipeline_mode = #tpu.pipeline_mode<synchronous>, transform_indices = @transform_8, window_bounds = array<i64: 1, 256>}, {pipeline_mode = #tpu.pipeline_mode<synchronous>, transform_indices = @transform_9, window_bounds = array<i64: 128, 128>}, {pipeline_mode = #tpu.pipeline_mode<synchronous>, transform_indices = @transform_10, window_bounds = array<i64: 1, 128>}, {transform_indices = @transform_11, window_bounds = array<i64: 1, 8, 128>}]} {
    %c0 = arith.constant 0 : index
    %c0_0 = arith.constant 0 : index
    %c0_1 = arith.constant 0 : index
    %0 = vector.load %arg1[%c0, %c0_0, %c0_1] : memref<1x8x128xf32, #tpu.memory_space<vmem>>, vector<1x8x128xf32>
    %1 = vector.shape_cast %0 : vector<1x8x128xf32> to vector<8x128xf32>
    %c0_2 = arith.constant 0 : index
    %c0_3 = arith.constant 0 : index
    %c0_4 = arith.constant 0 : index
    %2 = vector.load %arg2[%c0_2, %c0_3, %c0_4] : memref<1x8x128xf32, #tpu.memory_space<vmem>>, vector<1x8x128xf32>
    %3 = vector.shape_cast %2 : vector<1x8x128xf32> to vector<8x128xf32>
    %c0_5 = arith.constant 0 : index
    %c0_6 = arith.constant 0 : index
    %4 = vector.load %arg4[%c0_5, %c0_6] : memref<1x128xf32, #tpu.memory_space<vmem>>, vector<1x128xf32>
    %c0_7 = arith.constant 0 : index
    %c0_8 = arith.constant 0 : index
    %5 = vector.load %arg5[%c0_7, %c0_8] : memref<1x128xf32, #tpu.memory_space<vmem>>, vector<1x128xf32>
    %cst = arith.constant dense<0.000000e+00> : vector<8xf32>
    %6 = vector.multi_reduction <add>, %1, %cst [1] : vector<8x128xf32> to vector<8xf32>
    %7 = vector.shape_cast %6 : vector<8xf32> to vector<8x1xf32>
    %cst_9 = arith.constant 1.280000e+02 : f32
    %8 = vector.broadcast %cst_9 : f32 to vector<8x1xf32>
    %9 = arith.divf %7, %8 : vector<8x1xf32>
    %10 = vector.broadcast %9 : vector<8x1xf32> to vector<8x128xf32>
    %11 = arith.subf %1, %10 : vector<8x128xf32>
    %12 = arith.mulf %11, %11 : vector<8x128xf32>
    %cst_10 = arith.constant dense<0.000000e+00> : vector<8xf32>
    %13 = vector.multi_reduction <add>, %12, %cst_10 [1] : vector<8x128xf32> to vector<8xf32>
    %14 = vector.shape_cast %13 : vector<8xf32> to vector<8x1xf32>
    %cst_11 = arith.constant 1.270000e+02 : f32
    %15 = vector.broadcast %cst_11 : f32 to vector<8x1xf32>
    %16 = arith.divf %14, %15 : vector<8x1xf32>
    %17 = vector.broadcast %4 : vector<1x128xf32> to vector<8x128xf32>
    %18 = arith.mulf %17, %11 : vector<8x128xf32>
    %19 = math.sqrt %16 : vector<8x1xf32>
    %cst_12 = arith.constant 9.99999997E-7 : f32
    %20 = vector.broadcast %cst_12 : f32 to vector<8x1xf32>
    %21 = arith.addf %19, %20 : vector<8x1xf32>
    %22 = vector.broadcast %21 : vector<8x1xf32> to vector<8x128xf32>
    %23 = arith.divf %18, %22 : vector<8x128xf32>
    %24 = vector.broadcast %5 : vector<1x128xf32> to vector<8x128xf32>
    %25 = arith.addf %23, %24 : vector<8x128xf32>
    %c0_13 = arith.constant 0 : index
    %c0_14 = arith.constant 0 : index
    %26 = vector.load %arg6[%c0_13, %c0_14] : memref<128x128xf32, #tpu.memory_space<vmem>>, vector<128x128xf32>
    %cst_15 = arith.constant dense<0.000000e+00> : vector<8x128xf32>
    %27 = tpu.matmul %25, %26, %cst_15 {dimension_numbers = #tpu.dot_dimension_numbers<[1], [0], [0], [1], [0, 0, 1, 1], [], []>} : vector<8x128xf32>, vector<128x128xf32>, vector<8x128xf32> -> vector<8x128xf32>
    %c0_16 = arith.constant 0 : index
    %c0_17 = arith.constant 0 : index
    %28 = vector.load %arg7[%c0_16, %c0_17] : memref<1x128xf32, #tpu.memory_space<vmem>>, vector<1x128xf32>
    %29 = vector.broadcast %28 : vector<1x128xf32> to vector<8x128xf32>
    %30 = arith.addf %27, %29 : vector<8x128xf32>
    %c0_18 = arith.constant 0 : index
    %c0_19 = arith.constant 0 : index
    %31 = vector.load %arg8[%c0_18, %c0_19] : memref<128x256xf32, #tpu.memory_space<vmem>>, vector<128x256xf32>
    %cst_20 = arith.constant dense<0.000000e+00> : vector<8x256xf32>
    %32 = tpu.matmul %3, %31, %cst_20 {dimension_numbers = #tpu.dot_dimension_numbers<[1], [0], [0], [1], [0, 0, 1, 1], [], []>} : vector<8x128xf32>, vector<128x256xf32>, vector<8x256xf32> -> vector<8x256xf32>
    %c0_21 = arith.constant 0 : index
    %c0_22 = arith.constant 0 : index
    %33 = vector.load %arg9[%c0_21, %c0_22] : memref<1x256xf32, #tpu.memory_space<vmem>>, vector<1x256xf32>
    %34 = vector.broadcast %33 : vector<1x256xf32> to vector<8x256xf32>
    %35 = arith.addf %32, %34 : vector<8x256xf32>
    %36 = vector.extract_strided_slice %35 {offsets = [0, 0], sizes = [8, 128], strides = [1, 1]} : vector<8x256xf32> to vector<8x128xf32>
    %37 = vector.extract_strided_slice %35 {offsets = [0, 128], sizes = [8, 128], strides = [1, 1]} : vector<8x256xf32> to vector<8x128xf32>
    %c0_23 = arith.constant 0 : index
    %c0_24 = arith.constant 0 : index
    %c0_25 = arith.constant 0 : index
    %38 = vector.load %arg3[%c0_23, %c0_24, %c0_25] : memref<1x8x8xf32, #tpu.memory_space<vmem>>, vector<1x8x8xf32>
    %39 = vector.shape_cast %38 : vector<1x8x8xf32> to vector<8x8xf32>
    %40 = vector.extract_strided_slice %30 {offsets = [0, 0], sizes = [8, 32], strides = [1, 1]} : vector<8x128xf32> to vector<8x32xf32>
    %41 = vector.extract_strided_slice %36 {offsets = [0, 0], sizes = [8, 32], strides = [1, 1]} : vector<8x128xf32> to vector<8x32xf32>
    %42 = vector.extract_strided_slice %37 {offsets = [0, 0], sizes = [8, 32], strides = [1, 1]} : vector<8x128xf32> to vector<8x32xf32>
    %cst_26 = arith.constant dense<0.000000e+00> : vector<8x8xf32>
    %43 = tpu.matmul %40, %41, %cst_26 {dimension_numbers = #tpu.dot_dimension_numbers<[1], [1], [0], [0], [0, 0, 1, 0], [], []>} : vector<8x32xf32>, vector<8x32xf32>, vector<8x8xf32> -> vector<8x8xf32>
    %cst_27 = arith.constant 0.176776692 : f32
    %44 = vector.broadcast %cst_27 : f32 to vector<8x8xf32>
    %45 = arith.mulf %43, %44 : vector<8x8xf32>
    %cst_28 = arith.constant 0.000000e+00 : f32
    %46 = vector.broadcast %cst_28 : f32 to vector<8x8xf32>
    %47 = arith.cmpf ogt, %39, %46 : vector<8x8xf32>
    %cst_29 = arith.constant -1.000000e+09 : f32
    %48 = vector.broadcast %cst_29 : f32 to vector<8x8xf32>
    %49 = arith.select %47, %45, %48 : vector<8x8xi1>, vector<8x8xf32>
    %cst_30 = arith.constant dense<0xFF800000> : vector<8xf32>
    %50 = vector.multi_reduction <maximumf>, %49, %cst_30 [1] : vector<8x8xf32> to vector<8xf32>
    %51 = vector.shape_cast %50 : vector<8xf32> to vector<8x1xf32>
    %52 = vector.broadcast %51 : vector<8x1xf32> to vector<8x8xf32>
    %53 = arith.subf %49, %52 : vector<8x8xf32>
    %54 = math.exp %53 : vector<8x8xf32>
    %cst_31 = arith.constant dense<0.000000e+00> : vector<8xf32>
    %55 = vector.multi_reduction <add>, %54, %cst_31 [1] : vector<8x8xf32> to vector<8xf32>
    %56 = vector.shape_cast %55 : vector<8xf32> to vector<8x1xf32>
    %57 = tpu.reciprocal %56 {approx = true} : vector<8x1xf32> -> vector<8x1xf32>
    %58 = vector.broadcast %57 : vector<8x1xf32> to vector<8x8xf32>
    %59 = arith.mulf %54, %58 : vector<8x8xf32>
    %cst_32 = arith.constant dense<0.000000e+00> : vector<8x32xf32>
    %60 = tpu.matmul %59, %42, %cst_32 {dimension_numbers = #tpu.dot_dimension_numbers<[1], [0], [0], [1], [0, 0, 1, 1], [], []>} : vector<8x8xf32>, vector<8x32xf32>, vector<8x32xf32> -> vector<8x32xf32>
    %61 = vector.extract_strided_slice %30 {offsets = [0, 32], sizes = [8, 32], strides = [1, 1]} : vector<8x128xf32> to vector<8x32xf32>
    %62 = vector.extract_strided_slice %36 {offsets = [0, 32], sizes = [8, 32], strides = [1, 1]} : vector<8x128xf32> to vector<8x32xf32>
    %63 = vector.extract_strided_slice %37 {offsets = [0, 32], sizes = [8, 32], strides = [1, 1]} : vector<8x128xf32> to vector<8x32xf32>
    %cst_33 = arith.constant dense<0.000000e+00> : vector<8x8xf32>
    %64 = tpu.matmul %61, %62, %cst_33 {dimension_numbers = #tpu.dot_dimension_numbers<[1], [1], [0], [0], [0, 0, 1, 0], [], []>} : vector<8x32xf32>, vector<8x32xf32>, vector<8x8xf32> -> vector<8x8xf32>
    %cst_34 = arith.constant 0.176776692 : f32
    %65 = vector.broadcast %cst_34 : f32 to vector<8x8xf32>
    %66 = arith.mulf %64, %65 : vector<8x8xf32>
    %cst_35 = arith.constant 0.000000e+00 : f32
    %67 = vector.broadcast %cst_35 : f32 to vector<8x8xf32>
    %68 = arith.cmpf ogt, %39, %67 : vector<8x8xf32>
    %cst_36 = arith.constant -1.000000e+09 : f32
    %69 = vector.broadcast %cst_36 : f32 to vector<8x8xf32>
    %70 = arith.select %68, %66, %69 : vector<8x8xi1>, vector<8x8xf32>
    %cst_37 = arith.constant dense<0xFF800000> : vector<8xf32>
    %71 = vector.multi_reduction <maximumf>, %70, %cst_37 [1] : vector<8x8xf32> to vector<8xf32>
    %72 = vector.shape_cast %71 : vector<8xf32> to vector<8x1xf32>
    %73 = vector.broadcast %72 : vector<8x1xf32> to vector<8x8xf32>
    %74 = arith.subf %70, %73 : vector<8x8xf32>
    %75 = math.exp %74 : vector<8x8xf32>
    %cst_38 = arith.constant dense<0.000000e+00> : vector<8xf32>
    %76 = vector.multi_reduction <add>, %75, %cst_38 [1] : vector<8x8xf32> to vector<8xf32>
    %77 = vector.shape_cast %76 : vector<8xf32> to vector<8x1xf32>
    %78 = tpu.reciprocal %77 {approx = true} : vector<8x1xf32> -> vector<8x1xf32>
    %79 = vector.broadcast %78 : vector<8x1xf32> to vector<8x8xf32>
    %80 = arith.mulf %75, %79 : vector<8x8xf32>
    %cst_39 = arith.constant dense<0.000000e+00> : vector<8x32xf32>
    %81 = tpu.matmul %80, %63, %cst_39 {dimension_numbers = #tpu.dot_dimension_numbers<[1], [0], [0], [1], [0, 0, 1, 1], [], []>} : vector<8x8xf32>, vector<8x32xf32>, vector<8x32xf32> -> vector<8x32xf32>
    %82 = vector.extract_strided_slice %30 {offsets = [0, 64], sizes = [8, 32], strides = [1, 1]} : vector<8x128xf32> to vector<8x32xf32>
    %83 = vector.extract_strided_slice %36 {offsets = [0, 64], sizes = [8, 32], strides = [1, 1]} : vector<8x128xf32> to vector<8x32xf32>
    %84 = vector.extract_strided_slice %37 {offsets = [0, 64], sizes = [8, 32], strides = [1, 1]} : vector<8x128xf32> to vector<8x32xf32>
    %cst_40 = arith.constant dense<0.000000e+00> : vector<8x8xf32>
    %85 = tpu.matmul %82, %83, %cst_40 {dimension_numbers = #tpu.dot_dimension_numbers<[1], [1], [0], [0], [0, 0, 1, 0], [], []>} : vector<8x32xf32>, vector<8x32xf32>, vector<8x8xf32> -> vector<8x8xf32>
    %cst_41 = arith.constant 0.176776692 : f32
    %86 = vector.broadcast %cst_41 : f32 to vector<8x8xf32>
    %87 = arith.mulf %85, %86 : vector<8x8xf32>
    %cst_42 = arith.constant 0.000000e+00 : f32
    %88 = vector.broadcast %cst_42 : f32 to vector<8x8xf32>
    %89 = arith.cmpf ogt, %39, %88 : vector<8x8xf32>
    %cst_43 = arith.constant -1.000000e+09 : f32
    %90 = vector.broadcast %cst_43 : f32 to vector<8x8xf32>
    %91 = arith.select %89, %87, %90 : vector<8x8xi1>, vector<8x8xf32>
    %cst_44 = arith.constant dense<0xFF800000> : vector<8xf32>
    %92 = vector.multi_reduction <maximumf>, %91, %cst_44 [1] : vector<8x8xf32> to vector<8xf32>
    %93 = vector.shape_cast %92 : vector<8xf32> to vector<8x1xf32>
    %94 = vector.broadcast %93 : vector<8x1xf32> to vector<8x8xf32>
    %95 = arith.subf %91, %94 : vector<8x8xf32>
    %96 = math.exp %95 : vector<8x8xf32>
    %cst_45 = arith.constant dense<0.000000e+00> : vector<8xf32>
    %97 = vector.multi_reduction <add>, %96, %cst_45 [1] : vector<8x8xf32> to vector<8xf32>
    %98 = vector.shape_cast %97 : vector<8xf32> to vector<8x1xf32>
    %99 = tpu.reciprocal %98 {approx = true} : vector<8x1xf32> -> vector<8x1xf32>
    %100 = vector.broadcast %99 : vector<8x1xf32> to vector<8x8xf32>
    %101 = arith.mulf %96, %100 : vector<8x8xf32>
    %cst_46 = arith.constant dense<0.000000e+00> : vector<8x32xf32>
    %102 = tpu.matmul %101, %84, %cst_46 {dimension_numbers = #tpu.dot_dimension_numbers<[1], [0], [0], [1], [0, 0, 1, 1], [], []>} : vector<8x8xf32>, vector<8x32xf32>, vector<8x32xf32> -> vector<8x32xf32>
    %103 = vector.extract_strided_slice %30 {offsets = [0, 96], sizes = [8, 32], strides = [1, 1]} : vector<8x128xf32> to vector<8x32xf32>
    %104 = vector.extract_strided_slice %36 {offsets = [0, 96], sizes = [8, 32], strides = [1, 1]} : vector<8x128xf32> to vector<8x32xf32>
    %105 = vector.extract_strided_slice %37 {offsets = [0, 96], sizes = [8, 32], strides = [1, 1]} : vector<8x128xf32> to vector<8x32xf32>
    %cst_47 = arith.constant dense<0.000000e+00> : vector<8x8xf32>
    %106 = tpu.matmul %103, %104, %cst_47 {dimension_numbers = #tpu.dot_dimension_numbers<[1], [1], [0], [0], [0, 0, 1, 0], [], []>} : vector<8x32xf32>, vector<8x32xf32>, vector<8x8xf32> -> vector<8x8xf32>
    %cst_48 = arith.constant 0.176776692 : f32
    %107 = vector.broadcast %cst_48 : f32 to vector<8x8xf32>
    %108 = arith.mulf %106, %107 : vector<8x8xf32>
    %cst_49 = arith.constant 0.000000e+00 : f32
    %109 = vector.broadcast %cst_49 : f32 to vector<8x8xf32>
    %110 = arith.cmpf ogt, %39, %109 : vector<8x8xf32>
    %cst_50 = arith.constant -1.000000e+09 : f32
    %111 = vector.broadcast %cst_50 : f32 to vector<8x8xf32>
    %112 = arith.select %110, %108, %111 : vector<8x8xi1>, vector<8x8xf32>
    %cst_51 = arith.constant dense<0xFF800000> : vector<8xf32>
    %113 = vector.multi_reduction <maximumf>, %112, %cst_51 [1] : vector<8x8xf32> to vector<8xf32>
    %114 = vector.shape_cast %113 : vector<8xf32> to vector<8x1xf32>
    %115 = vector.broadcast %114 : vector<8x1xf32> to vector<8x8xf32>
    %116 = arith.subf %112, %115 : vector<8x8xf32>
    %117 = math.exp %116 : vector<8x8xf32>
    %cst_52 = arith.constant dense<0.000000e+00> : vector<8xf32>
    %118 = vector.multi_reduction <add>, %117, %cst_52 [1] : vector<8x8xf32> to vector<8xf32>
    %119 = vector.shape_cast %118 : vector<8xf32> to vector<8x1xf32>
    %120 = tpu.reciprocal %119 {approx = true} : vector<8x1xf32> -> vector<8x1xf32>
    %121 = vector.broadcast %120 : vector<8x1xf32> to vector<8x8xf32>
    %122 = arith.mulf %117, %121 : vector<8x8xf32>
    %cst_53 = arith.constant dense<0.000000e+00> : vector<8x32xf32>
    %123 = tpu.matmul %122, %105, %cst_53 {dimension_numbers = #tpu.dot_dimension_numbers<[1], [0], [0], [1], [0, 0, 1, 1], [], []>} : vector<8x8xf32>, vector<8x32xf32>, vector<8x32xf32> -> vector<8x32xf32>
    %124 = tpu.concatenate %60, %81, %102, %123 in 1 : vector<8x32xf32>, vector<8x32xf32>, vector<8x32xf32>, vector<8x32xf32> -> vector<8x128xf32>
    %c0_54 = arith.constant 0 : index
    %c0_55 = arith.constant 0 : index
    %125 = vector.load %arg10[%c0_54, %c0_55] : memref<128x128xf32, #tpu.memory_space<vmem>>, vector<128x128xf32>
    %cst_56 = arith.constant dense<0.000000e+00> : vector<8x128xf32>
    %126 = tpu.matmul %124, %125, %cst_56 {dimension_numbers = #tpu.dot_dimension_numbers<[1], [0], [0], [1], [0, 0, 1, 1], [], []>} : vector<8x128xf32>, vector<128x128xf32>, vector<8x128xf32> -> vector<8x128xf32>
    %127 = arith.addf %1, %126 : vector<8x128xf32>
    %c0_57 = arith.constant 0 : index
    %c0_58 = arith.constant 0 : index
    %128 = vector.load %arg11[%c0_57, %c0_58] : memref<1x128xf32, #tpu.memory_space<vmem>>, vector<1x128xf32>
    %129 = vector.broadcast %128 : vector<1x128xf32> to vector<8x128xf32>
    %130 = arith.addf %127, %129 : vector<8x128xf32>
    %c0_59 = arith.constant 0 : index
    %c0_60 = arith.constant 0 : index
    %c0_61 = arith.constant 0 : index
    %131 = vector.load %arg12[%c0_59, %c0_60, %c0_61] : memref<1x8x128xf32, #tpu.memory_space<vmem>>, vector<1x8x128xf32>
    %132 = vector.shape_cast %131 : vector<1x8x128xf32> to vector<8x128xf32>
    %133 = vector.shape_cast %130 : vector<8x128xf32> to vector<1x8x128xf32>
    tpu.vector_store %arg12[%c0_59, %c0_60, %c0_61], %133 {strides = array<i32>} : memref<1x8x128xf32, #tpu.memory_space<vmem>>, vector<1x8x128xf32>,
    return
  }
  func.func @transform_0(%arg0: i32) -> (i32, i32, i32) {
    %c0_i32 = arith.constant 0 : i32
    %c0_i32_0 = arith.constant 0 : i32
    %c0_i32_1 = arith.constant 0 : i32
    return %arg0, %c0_i32, %c0_i32_0 : i32, i32, i32
  }
  func.func @transform_1(%arg0: i32) -> (i32, i32, i32) {
    %c0_i32 = arith.constant 0 : i32
    %c0_i32_0 = arith.constant 0 : i32
    %c0_i32_1 = arith.constant 0 : i32
    return %arg0, %c0_i32, %c0_i32_0 : i32, i32, i32
  }
  func.func @transform_2(%arg0: i32) -> (i32, i32, i32) {
    %c0_i32 = arith.constant 0 : i32
    %c0_i32_0 = arith.constant 0 : i32
    %c0_i32_1 = arith.constant 0 : i32
    return %arg0, %c0_i32, %c0_i32_0 : i32, i32, i32
  }
  func.func @transform_3(%arg0: i32) -> (i32, i32) {
    %c0_i32 = arith.constant 0 : i32
    %c0_i32_0 = arith.constant 0 : i32
    %c0_i32_1 = arith.constant 0 : i32
    return %c0_i32, %c0_i32_0 : i32, i32
  }
  func.func @transform_4(%arg0: i32) -> (i32, i32) {
    %c0_i32 = arith.constant 0 : i32
    %c0_i32_0 = arith.constant 0 : i32
    %c0_i32_1 = arith.constant 0 : i32
    return %c0_i32, %c0_i32_0 : i32, i32
  }
  func.func @transform_5(%arg0: i32) -> (i32, i32) {
    %c0_i32 = arith.constant 0 : i32
    %c0_i32_0 = arith.constant 0 : i32
    %c0_i32_1 = arith.constant 0 : i32
    return %c0_i32, %c0_i32_0 : i32, i32
  }
  func.func @transform_6(%arg0: i32) -> (i32, i32) {
    %c0_i32 = arith.constant 0 : i32
    %c0_i32_0 = arith.constant 0 : i32
    %c0_i32_1 = arith.constant 0 : i32
    return %c0_i32, %c0_i32_0 : i32, i32
  }
  func.func @transform_7(%arg0: i32) -> (i32, i32) {
    %c0_i32 = arith.constant 0 : i32
    %c0_i32_0 = arith.constant 0 : i32
    %c0_i32_1 = arith.constant 0 : i32
    return %c0_i32, %c0_i32_0 : i32, i32
  }
  func.func @transform_8(%arg0: i32) -> (i32, i32) {
    %c0_i32 = arith.constant 0 : i32
    %c0_i32_0 = arith.constant 0 : i32
    %c0_i32_1 = arith.constant 0 : i32
    return %c0_i32, %c0_i32_0 : i32, i32
  }
  func.func @transform_9(%arg0: i32) -> (i32, i32) {
    %c0_i32 = arith.constant 0 : i32
    %c0_i32_0 = arith.constant 0 : i32
    %c0_i32_1 = arith.constant 0 : i32
    return %c0_i32, %c0_i32_0 : i32, i32
  }
  func.func @transform_10(%arg0: i32) -> (i32, i32) {
    %c0_i32 = arith.constant 0 : i32
    %c0_i32_0 = arith.constant 0 : i32
    %c0_i32_1 = arith.constant 0 : i32
    return %c0_i32, %c0_i32_0 : i32, i32
  }
  func.func @transform_11(%arg0: i32) -> (i32, i32, i32) {
    %c0_i32 = arith.constant 0 : i32
    %c0_i32_0 = arith.constant 0 : i32
    %c0_i32_1 = arith.constant 0 : i32
    return %arg0, %c0_i32, %c0_i32_0 : i32, i32, i32
  }
}

module attributes {stable_mosaic.version = 11 : i64} {
  func.func @_ffn_kernel(%arg0: i32, %arg1: memref<1x8x128xf32, #tpu.memory_space<vmem>>, %arg2: memref<1x128xf32, #tpu.memory_space<vmem>>, %arg3: memref<1x128xf32, #tpu.memory_space<vmem>>, %arg4: memref<128x256xf32, #tpu.memory_space<vmem>>, %arg5: memref<1x256xf32, #tpu.memory_space<vmem>>, %arg6: memref<256x128xf32, #tpu.memory_space<vmem>>, %arg7: memref<1x128xf32, #tpu.memory_space<vmem>>, %arg8: memref<1x8x128xf32, #tpu.memory_space<vmem>>) attributes {dimension_semantics = [#tpu.dimension_semantics<parallel>], iteration_bounds = array<i64: 2>, scalar_prefetch = 0 : i64, scratch_operands = 0 : i64, tpu.core_type = #tpu.core_type<tc>, window_params = [{transform_indices = @transform_0, window_bounds = array<i64: 1, 8, 128>}, {pipeline_mode = #tpu.pipeline_mode<synchronous>, transform_indices = @transform_1, window_bounds = array<i64: 1, 128>}, {pipeline_mode = #tpu.pipeline_mode<synchronous>, transform_indices = @transform_2, window_bounds = array<i64: 1, 128>}, {pipeline_mode = #tpu.pipeline_mode<synchronous>, transform_indices = @transform_3, window_bounds = array<i64: 128, 256>}, {pipeline_mode = #tpu.pipeline_mode<synchronous>, transform_indices = @transform_4, window_bounds = array<i64: 1, 256>}, {pipeline_mode = #tpu.pipeline_mode<synchronous>, transform_indices = @transform_5, window_bounds = array<i64: 256, 128>}, {pipeline_mode = #tpu.pipeline_mode<synchronous>, transform_indices = @transform_6, window_bounds = array<i64: 1, 128>}, {transform_indices = @transform_7, window_bounds = array<i64: 1, 8, 128>}]} {
    %c0 = arith.constant 0 : index
    %c0_0 = arith.constant 0 : index
    %c0_1 = arith.constant 0 : index
    %0 = vector.load %arg1[%c0, %c0_0, %c0_1] : memref<1x8x128xf32, #tpu.memory_space<vmem>>, vector<1x8x128xf32>
    %1 = vector.shape_cast %0 : vector<1x8x128xf32> to vector<8x128xf32>
    %c0_2 = arith.constant 0 : index
    %c0_3 = arith.constant 0 : index
    %2 = vector.load %arg2[%c0_2, %c0_3] : memref<1x128xf32, #tpu.memory_space<vmem>>, vector<1x128xf32>
    %c0_4 = arith.constant 0 : index
    %c0_5 = arith.constant 0 : index
    %3 = vector.load %arg3[%c0_4, %c0_5] : memref<1x128xf32, #tpu.memory_space<vmem>>, vector<1x128xf32>
    %cst = arith.constant dense<0.000000e+00> : vector<8xf32>
    %4 = vector.multi_reduction <add>, %1, %cst [1] : vector<8x128xf32> to vector<8xf32>
    %5 = vector.shape_cast %4 : vector<8xf32> to vector<8x1xf32>
    %cst_6 = arith.constant 1.280000e+02 : f32
    %6 = vector.broadcast %cst_6 : f32 to vector<8x1xf32>
    %7 = arith.divf %5, %6 : vector<8x1xf32>
    %8 = vector.broadcast %7 : vector<8x1xf32> to vector<8x128xf32>
    %9 = arith.subf %1, %8 : vector<8x128xf32>
    %10 = arith.mulf %9, %9 : vector<8x128xf32>
    %cst_7 = arith.constant dense<0.000000e+00> : vector<8xf32>
    %11 = vector.multi_reduction <add>, %10, %cst_7 [1] : vector<8x128xf32> to vector<8xf32>
    %12 = vector.shape_cast %11 : vector<8xf32> to vector<8x1xf32>
    %cst_8 = arith.constant 1.270000e+02 : f32
    %13 = vector.broadcast %cst_8 : f32 to vector<8x1xf32>
    %14 = arith.divf %12, %13 : vector<8x1xf32>
    %15 = vector.broadcast %2 : vector<1x128xf32> to vector<8x128xf32>
    %16 = arith.mulf %15, %9 : vector<8x128xf32>
    %17 = math.sqrt %14 : vector<8x1xf32>
    %cst_9 = arith.constant 9.99999997E-7 : f32
    %18 = vector.broadcast %cst_9 : f32 to vector<8x1xf32>
    %19 = arith.addf %17, %18 : vector<8x1xf32>
    %20 = vector.broadcast %19 : vector<8x1xf32> to vector<8x128xf32>
    %21 = arith.divf %16, %20 : vector<8x128xf32>
    %22 = vector.broadcast %3 : vector<1x128xf32> to vector<8x128xf32>
    %23 = arith.addf %21, %22 : vector<8x128xf32>
    %c0_10 = arith.constant 0 : index
    %c0_11 = arith.constant 0 : index
    %24 = vector.load %arg4[%c0_10, %c0_11] : memref<128x256xf32, #tpu.memory_space<vmem>>, vector<128x256xf32>
    %cst_12 = arith.constant dense<0.000000e+00> : vector<8x256xf32>
    %25 = tpu.matmul %23, %24, %cst_12 {dimension_numbers = #tpu.dot_dimension_numbers<[1], [0], [0], [1], [0, 0, 1, 1], [], []>} : vector<8x128xf32>, vector<128x256xf32>, vector<8x256xf32> -> vector<8x256xf32>
    %c0_13 = arith.constant 0 : index
    %c0_14 = arith.constant 0 : index
    %26 = vector.load %arg5[%c0_13, %c0_14] : memref<1x256xf32, #tpu.memory_space<vmem>>, vector<1x256xf32>
    %27 = vector.broadcast %26 : vector<1x256xf32> to vector<8x256xf32>
    %28 = arith.addf %25, %27 : vector<8x256xf32>
    %cst_15 = arith.constant 0.000000e+00 : f32
    %29 = vector.broadcast %cst_15 : f32 to vector<8x256xf32>
    %30 = arith.maximumf %28, %29 : vector<8x256xf32>
    %c0_16 = arith.constant 0 : index
    %c0_17 = arith.constant 0 : index
    %31 = vector.load %arg6[%c0_16, %c0_17] : memref<256x128xf32, #tpu.memory_space<vmem>>, vector<256x128xf32>
    %cst_18 = arith.constant dense<0.000000e+00> : vector<8x128xf32>
    %32 = tpu.matmul %30, %31, %cst_18 {dimension_numbers = #tpu.dot_dimension_numbers<[1], [0], [0], [1], [0, 0, 1, 1], [], []>} : vector<8x256xf32>, vector<256x128xf32>, vector<8x128xf32> -> vector<8x128xf32>
    %33 = arith.addf %1, %32 : vector<8x128xf32>
    %c0_19 = arith.constant 0 : index
    %c0_20 = arith.constant 0 : index
    %34 = vector.load %arg7[%c0_19, %c0_20] : memref<1x128xf32, #tpu.memory_space<vmem>>, vector<1x128xf32>
    %35 = vector.broadcast %34 : vector<1x128xf32> to vector<8x128xf32>
    %36 = arith.addf %33, %35 : vector<8x128xf32>
    %c0_21 = arith.constant 0 : index
    %c0_22 = arith.constant 0 : index
    %c0_23 = arith.constant 0 : index
    %37 = vector.load %arg8[%c0_21, %c0_22, %c0_23] : memref<1x8x128xf32, #tpu.memory_space<vmem>>, vector<1x8x128xf32>
    %38 = vector.shape_cast %37 : vector<1x8x128xf32> to vector<8x128xf32>
    %39 = vector.shape_cast %36 : vector<8x128xf32> to vector<1x8x128xf32>
    tpu.vector_store %arg8[%c0_21, %c0_22, %c0_23], %39 {strides = array<i32>} : memref<1x8x128xf32, #tpu.memory_space<vmem>>, vector<1x8x128xf32>,
    return
  }
  func.func @transform_0(%arg0: i32) -> (i32, i32, i32) {
    %c0_i32 = arith.constant 0 : i32
    %c0_i32_0 = arith.constant 0 : i32
    %c0_i32_1 = arith.constant 0 : i32
    return %arg0, %c0_i32, %c0_i32_0 : i32, i32, i32
  }
  func.func @transform_1(%arg0: i32) -> (i32, i32) {
    %c0_i32 = arith.constant 0 : i32
    %c0_i32_0 = arith.constant 0 : i32
    %c0_i32_1 = arith.constant 0 : i32
    return %c0_i32, %c0_i32_0 : i32, i32
  }
  func.func @transform_2(%arg0: i32) -> (i32, i32) {
    %c0_i32 = arith.constant 0 : i32
    %c0_i32_0 = arith.constant 0 : i32
    %c0_i32_1 = arith.constant 0 : i32
    return %c0_i32, %c0_i32_0 : i32, i32
  }
  func.func @transform_3(%arg0: i32) -> (i32, i32) {
    %c0_i32 = arith.constant 0 : i32
    %c0_i32_0 = arith.constant 0 : i32
    %c0_i32_1 = arith.constant 0 : i32
    return %c0_i32, %c0_i32_0 : i32, i32
  }
  func.func @transform_4(%arg0: i32) -> (i32, i32) {
    %c0_i32 = arith.constant 0 : i32
    %c0_i32_0 = arith.constant 0 : i32
    %c0_i32_1 = arith.constant 0 : i32
    return %c0_i32, %c0_i32_0 : i32, i32
  }
  func.func @transform_5(%arg0: i32) -> (i32, i32) {
    %c0_i32 = arith.constant 0 : i32
    %c0_i32_0 = arith.constant 0 : i32
    %c0_i32_1 = arith.constant 0 : i32
    return %c0_i32, %c0_i32_0 : i32, i32
  }
  func.func @transform_6(%arg0: i32) -> (i32, i32) {
    %c0_i32 = arith.constant 0 : i32
    %c0_i32_0 = arith.constant 0 : i32
    %c0_i32_1 = arith.constant 0 : i32
    return %c0_i32, %c0_i32_0 : i32, i32
  }
  func.func @transform_7(%arg0: i32) -> (i32, i32, i32) {
    %c0_i32 = arith.constant 0 : i32
    %c0_i32_0 = arith.constant 0 : i32
    %c0_i32_1 = arith.constant 0 : i32
    return %arg0, %c0_i32, %c0_i32_0 : i32, i32, i32
  }
}

</mosaic_0001>

<bundles_post_ra>
// kernel: decoder_layer_forward.3
= control target key start
LH: loop header
LB: loop body
LE: loop exit
PB: predicated region body
PF: predicated region fallthrough
CT: control target
= control target key end

     0   :  { %s1683_s27 = smov 0   ;;  %s2048_s0 = inlined_call_operand.vmem [shape: f32[2,8,128], index: 0, kind: input, shape index: {}, may-alias: {0,8}]   ;;  %s2049_s1 = inlined_call_operand.vmem [shape: f32[2,8,8], index: 1, kind: input, shape index: {}]   ;;  %s2050_s2 = inlined_call_operand.vmem [shape: f32[1,128], index: 2, kind: input, shape index: {}]   ;;  %s2051_s3 = inlined_call_operand.vmem [shape: f32[1,128], index: 3, kind: input, shape index: {}]   ;;  %s2052_s4 = inlined_call_operand.vmem [shape: f32[128,384], index: 4, kind: input, shape index: {}]   ;;  %s2053_s5 = inlined_call_operand.vmem [shape: f32[1,384], index: 5, kind: input, shape index: {}]   ;;  %s2054_s6 = inlined_call_operand.vmem [shape: f32[128,128], index: 6, kind: input, shape index: {}]   ;;  %s2055_s7 = inlined_call_operand.vmem [shape: f32[1,128], index: 7, kind: input, shape index: {}]   ;;  %s2056_s8 = inlined_call_operand.vmem [shape: f32[2,8,128], index: 8, kind: output, shape index: {}, may-alias: {0,8}]  }
   0x1 LB: > { %s1407_s28 = sadd.s32 4294967295, %s1631_s27   ;;  %p1411_p0 = scmp.ge.s32.totalorder %s1631_s27, 1  ;;  %s1631_s27 = sphi %s1683_s27, %s18_s27  }
   0x2   : > { %p270_p1 = scmp.lt.s32.totalorder %s1631_s27, 3 }
   0x4   : > { %p271_p2 = pnand %p1411_p0, %p270_p1 }
   0x5   : > { %p306_p3 = scmp.lt.s32.totalorder (!%p271_p2), %s1407_s28, 1  ;;  %s1635_s13 = smov (!%p271_p2), 96  }
   0x6   : > { %274 = sbr.rel (%p271_p2) target bundleno = 3088 (0xc10), region = 52  ;;  %s1636_s17 = smov (!%p271_p2), 64  }
   0x7   : > { %s1637_s18 = smov (!%p271_p2), 32  }
   0xb   : > { %s2058_s28 = smov (!%p306_p3, %s1407_s28), 1  ;;  %v401_v5 = vld [vmem:[%s2052_s4 + $0x170] sm:$0xff]  ;;  %v1633_v6 = vmov 0.0   ;;  %v400_v7 = vld [vmem:[%s2052_s4 + $0x168] sm:$0xff]  ;;  %v402_v8 = vld [vmem:[%s2052_s4 + $0x178] sm:$0xff]  ;;  %vm1634_vm0 = vmmov 0  }
   0xc   : > { %s1691_s29 = sshll.u32 %s2058_s28, 3  ;;  %420 = vmatprep.subr.mxu0 %v401_v5  ;;  %1482 = vmatprep.subr.mxu1 %v1633_v6  ;;  %v398_v9 = vld [vmem:[%s2052_s4 + $0x158] sm:$0xff]  ;;  %v397_v10 = vld [vmem:[%s2052_s4 + $0x150] sm:$0xff]  ;;  %v399_v11 = vld [vmem:[%s2052_s4 + $0x160] sm:$0xff]  ;;  %vm562_vm3 = vcmask 261120   ;;  %vm642_vm5 = vcmask 64512  }
   0xd   : > { %s309_s10 = scalar_lea.vmem %s2048_s0, %s1691_s29  ;;  %421 = vmatpush1.msra.mxu0 %v400_v7  ;;  %1483 = vmatpush3.msra.mxu1 %v402_v8  ;;  %v395_v12 = vld [vmem:[%s2052_s4 + $0x140] sm:$0xff]  ;;  %v394_v13 = vld [vmem:[%s2052_s4 + $0x138] sm:$0xff]  ;;  %v396_v14 = vld [vmem:[%s2052_s4 + $0x148] sm:$0xff]  ;;  %v405_v7 = vlaneseq  ;;  %s313_s16 = scalar_lea.vmem %s2049_s1, %s1691_s29  ;;  %vm1242_vm6 = vcmask 523264   ;;  %vm1244_vm7 = vcmask 785408  }
   0xe   : > { %v1697_v0 = vld [vmem:[%s309_s10] sm:$0xff]  ;;  %422 = vmatprep.subr.mxu0 %v398_v9  ;;  %1484 = vmatprep.subr.mxu1 %v1633_v6  ;;  %v392_v15 = vld [vmem:[%s2052_s4 + $0x128] sm:$0xff]  ;;  %v393_v17 = vld [vmem:[%s2052_s4 + $0x130] sm:$0xff] }
   0xf   : > { %321 = vadd.xlane.f32.xlu0 %v1697_v0  ;;  %423 = vmatpush1.msra.mxu0 %v397_v10  ;;  %v391_v16 = vld [vmem:[%s2052_s4 + $0x120] sm:$0xff]  ;;  %v389_v18 = vld [vmem:[%s2052_s4 + $0x110] sm:$0xff]  ;;  %v388_v19 = vld [vmem:[%s2052_s4 + $0x108] sm:$0xff]  ;;  %v406_v8 = vshrl.u32 %v405_v7, 7 }
  0x10   : > { %1485 = vmatpush3.msra.mxu1 %v399_v11  ;;  %424 = vmatprep.subr.mxu0 %v395_v12  ;;  %v390_v20 = vld [vmem:[%s2052_s4 + $0x118] sm:$0xff]  ;;  %v385_v22 = vld [vmem:[%s2052_s4 + $0xf0] sm:$0xff]  ;;  %v387_v23 = vld [vmem:[%s2052_s4 + $0x100] sm:$0xff] }
  0x11   : > { %1486 = vmatprep.subr.mxu1 %v1633_v6  ;;  %425 = vmatpush1.msra.mxu0 %v394_v13  ;;  %v386_v21 = vld [vmem:[%s2052_s4 + $0xf8] sm:$0xff]  ;;  %v383_v24 = vld [vmem:[%s2052_s4 + $0xe0] sm:$0xff]  ;;  %v384_v26 = vld [vmem:[%s2052_s4 + $0xe8] sm:$0xff]  ;;  %v411_v9 = vsub.s32 1, %v406_v8  ;;  %v407_v10 = vsub.s32 0, %v406_v8  ;;  %v415_v11 = vsub.s32 2, %v406_v8 }
  0x12   : > { %1487 = vmatpush3.msra.mxu1 %v396_v14  ;;  %426 = vmatprep.subr.mxu0 %v392_v15  ;;  %v382_v25 = vld [vmem:[%s2052_s4 + $0xd8] sm:$0xff]  ;;  %v380_v27 = vld [vmem:[%s2052_s4 + $0xc8] sm:$0xff]  ;;  %v379_v28 = vld [vmem:[%s2052_s4 + $0xc0] sm:$0xff] }
  0x13   : > { %1488 = vmatprep.subr.mxu1 %v1633_v6  ;;  %427 = vmatpush1.msra.mxu0 %v391_v16  ;;  %v381_v29 = vld [vmem:[%s2052_s4 + $0xd0] sm:$0xff]  ;;  %v376_v31 = vld [vmem:[%s2052_s4 + $0xa8] sm:$0xff]  ;;  %v378_v32 = vld [vmem:[%s2052_s4 + $0xb8] sm:$0xff] }
  0x14   : > { %1489 = vmatpush3.msra.mxu1 %v393_v17  ;;  %428 = vmatprep.subr.mxu0 %v389_v18  ;;  %v377_v30 = vld [vmem:[%s2052_s4 + $0xb0] sm:$0xff]  ;;  %v374_v33 = vld [vmem:[%s2052_s4 + $0x98] sm:$0xff]  ;;  %v375_v35 = vld [vmem:[%s2052_s4 + $0xa0] sm:$0xff] }
  0x15   : > { %1490 = vmatprep.subr.mxu1 %v1633_v6  ;;  %429 = vmatpush1.msra.mxu0 %v388_v19  ;;  %v373_v34 = vld [vmem:[%s2052_s4 + $0x90] sm:$0xff]  ;;  %v371_v36 = vld [vmem:[%s2052_s4 + $0x80] sm:$0xff]  ;;  %v370_v37 = vld [vmem:[%s2052_s4 + $0x78] sm:$0xff] }
  0x16   : > { %1491 = vmatpush3.msra.mxu1 %v390_v20  ;;  %430 = vmatprep.subr.mxu0 %v386_v21  ;;  %v372_v38 = vld [vmem:[%s2052_s4 + $0x88] sm:$0xff]  ;;  %v367_v40 = vld [vmem:[%s2052_s4 + $0x60] sm:$0xff]  ;;  %v369_v41 = vld [vmem:[%s2052_s4 + $0x70] sm:$0xff] }
  0x17   : > { %1492 = vmatprep.subr.mxu1 %v1633_v6  ;;  %431 = vmatpush1.msra.mxu0 %v385_v22  ;;  %v368_v39 = vld [vmem:[%s2052_s4 + $0x68] sm:$0xff]  ;;  %v365_v42 = vld [vmem:[%s2052_s4 + $0x50] sm:$0xff]  ;;  %v366_v44 = vld [vmem:[%s2052_s4 + $0x58] sm:$0xff] }
  0x18   : > { %1493 = vmatpush3.msra.mxu1 %v387_v23  ;;  %432 = vmatprep.subr.mxu0 %v383_v24  ;;  %v364_v43 = vld [vmem:[%s2052_s4 + $0x48] sm:$0xff]  ;;  %v362_v45 = vld [vmem:[%s2052_s4 + $0x38] sm:$0xff]  ;;  %v361_v46 = vld [vmem:[%s2052_s4 + $0x30] sm:$0xff] }
  0x19   : > { %1494 = vmatprep.subr.mxu1 %v1633_v6  ;;  %433 = vmatpush1.msra.mxu0 %v382_v25  ;;  %v363_v47 = vld [vmem:[%s2052_s4 + $0x40] sm:$0xff]  ;;  %v358_v49 = vld [vmem:[%s2052_s4 + $0x18] sm:$0xff]  ;;  %v360_v50 = vld [vmem:[%s2052_s4 + $0x28] sm:$0xff] }
  0x1a   : > { %1495 = vmatpush3.msra.mxu1 %v384_v26  ;;  %434 = vmatprep.subr.mxu0 %v380_v27  ;;  %v359_v48 = vld [vmem:[%s2052_s4 + $0x20] sm:$0xff]  ;;  %v356_v51 = vld [vmem:[%s2052_s4 + $0x8] sm:$0xff]  ;;  %v357_v53 = vld [vmem:[%s2052_s4 + $0x10] sm:$0xff] }
  0x1b   : > { %1496 = vmatprep.subr.mxu1 %v1633_v6  ;;  %435 = vmatpush1.msra.mxu0 %v379_v28  ;;  %v355_v52 = vld [vmem:[%s2052_s4] sm:$0xff] }
  0x1c   : > { %1497 = vmatpush3.msra.mxu1 %v381_v29  ;;  %436 = vmatprep.subr.mxu0 %v377_v30  ;;  %v1415_v62 = vld [vmem:[%s2050_s2] ss:$0 sm:$0xff] }
  0x1d   : > { %1498 = vmatprep.subr.mxu1 %v1633_v6  ;;  %437 = vmatpush1.msra.mxu0 %v376_v31  ;;  %v1905_v22 = vld [vmem:[%s313_s16] sm:$0xff]  ;;  %s317_s16 = scalar_lea.vmem %s2056_s8, %s1691_s29 }
  0x1e   : > { %1499 = vmatpush3.msra.mxu1 %v378_v32  ;;  %438 = vmatprep.subr.mxu0 %v374_v33  ;;  %vm640_vm4 = vcmp.gt.f32.partialorder %v1905_v22, 0.0 }
  0x1f   : > { %1500 = vmatprep.subr.mxu1 %v1633_v6  ;;  %439 = vmatpush1.msra.mxu0 %v373_v34 }
  0x20   : > { %1501 = vmatpush3.msra.mxu1 %v375_v35  ;;  %440 = vmatprep.subr.mxu0 %v371_v36 }
  0x21   : > { %1502 = vmatprep.subr.mxu1 %v1633_v6  ;;  %441 = vmatpush1.msra.mxu0 %v370_v37 }
  0x22   : > { %1503 = vmatpush3.msra.mxu1 %v372_v38  ;;  %442 = vmatprep.subr.mxu0 %v368_v39 }
  0x23   : > { %1504 = vmatprep.subr.mxu1 %v1633_v6  ;;  %443 = vmatpush1.msra.mxu0 %v367_v40 }
  0x24   : > { %1505 = vmatpush3.msra.mxu1 %v369_v41  ;;  %444 = vmatprep.subr.mxu0 %v365_v42 }
  0x25   : > { %1506 = vmatprep.subr.mxu1 %v1633_v6  ;;  %445 = vmatpush1.msra.mxu0 %v364_v43 }
  0x26   : > { %1507 = vmatpush3.msra.mxu1 %v366_v44  ;;  %446 = vmatprep.subr.mxu0 %v362_v45 }
  0x27   : > { %1508 = vmatprep.subr.mxu1 %v1633_v6  ;;  %447 = vmatpush1.msra.mxu0 %v361_v46 }
  0x28   : > { %1509 = vmatpush3.msra.mxu1 %v363_v47  ;;  %448 = vmatprep.subr.mxu0 %v359_v48 }
  0x29   : > { %1510 = vmatprep.subr.mxu1 %v1633_v6  ;;  %449 = vmatpush1.msra.mxu0 %v358_v49 }
  0x2a   : > { %1511 = vmatpush3.msra.mxu1 %v360_v50  ;;  %450 = vmatprep.subr.mxu0 %v356_v51 }
  0x2b   : > { %1512 = vmatprep.subr.mxu1 %v1633_v6  ;;  %451 = vmatpush1.msra.mxu0 %v355_v52 }
  0x2c   : > { %484 = vmatprep.mubr.f32.mxu0 %v1633_v6  ;;  %1513 = vmatpush3.msra.mxu1 %v357_v53 }
  0x2d   : > { %1514 = vmatprep.mubr.msk.f32.mxu1 %vm1634_vm0, %v1633_v6  ;;  %1517 = vmatprep.subr.mxu1 %v1633_v6 }
  0x2e   : > { %1557 = vmatprep.subr.mxu0 %v1633_v6 }
  0x98   : > { %v322_v1 = vpop.xlane.xlu0 %321 }
  0x99   : > { %v324_v2 = vmul.f32 0.0078125, %v322_v1 }
  0x9b   : > { %v1701_v3 = vsub.f32 %v1697_v0, %v324_v2  ;;  %v1416_v2 = vld [vmem:[%s2051_s3] ss:$0 sm:$0xff] }
  0x9d   : > { %v326_v4 = vmul.f32 %v1701_v3, %v1701_v3  ;;  %v337_v63 = vmul.f32 %v1415_v62, %v1701_v3  ;;  %v403_v3 = vld [vmem:[%s2053_s5] sm:$0x7] }
  0x9e   : > { %v412_v12 = vrot.slane %v403_v3, %v411_v9  ;;  %v408_v15 = vrot.slane %v403_v3, %v407_v10  ;;  %v416_v18 = vrot.slane %v403_v3, %v415_v11 }
  0x9f   : > { %327 = vadd.xlane.f32.xlu0 %v326_v4 }
 0x128   : > { %v328_v54 = vpop.xlane.xlu0 %327 }
 0x129   : > { %v330_v55 = vmul.f32 0.007874016, %v328_v54 }
 0x12b   : > { %1605 = vrsqrt.f32 %v330_v55  ;;  %vm340_vm1 = vcmp.eq.f32.partialorder %v330_v55, inf  ;;  %v343_v58 = vand.u32 2147483648, %v330_v55  ;;  %vm342_vm2 = vcmp.eq.f32.partialorder %v330_v55, 0.0 }
 0x138   : > { %v1606_v56 = vpop.eup %1605 }
 0x139   : > { %v339_v57 = vmul.f32 %v1606_v56, %v330_v55 }
 0x13b   : > { %v341_v59 = vsel %vm340_vm1, %v330_v55, %v339_v57 }
 0x13c   : > { %v344_v60 = vsel %vm342_vm2, %v343_v58, %v341_v59 }
 0x13d   : > { %v345_v61 = vadd.f32 1e-06, %v344_v60 }
 0x13f   : > { %1607 = vrcp.f32 %v345_v61 }
 0x14c   : > { %v1608_v1 = vpop.eup %1607 }
 0x14d   : > { %v347_v4 = vmul.f32 %v1608_v1, %v337_v63 }
 0x14f   : > { %v354_v5 = vadd.f32 %v1416_v2, %v347_v4 }
 0x151   : > { %485 = vmatmul.mubr.f32.vlgmr.msra.gmra.mxu0 %v354_v5  ;;  %1515 = vmatmul.mubr.f32.vlgmr.msra.gmra.mxu1 %v354_v5 }
 0x152   : > { %1519 = vmatprep.mubr.msk.f32.mxu1 %vm1634_vm0, %v1633_v6  ;;  %1589 = vmatprep.mubr.msk.f32.mxu0 %vm1634_vm0, %v1633_v6 }
 0x211   : > { %v486_v13 = vpop.f32.mrf.mxu0  ;;  %v557_v14 = vpop.f32.mrf.mxu1 }
 0x212   : > { %v1890_v20 = vadd.f32 %v486_v13, %v408_v15  ;;  %v1893_v21 = vadd.f32 %v557_v14, %v416_v18 }
 0x213   : > { %v488_v16 = vpop.f32.mrf.mxu0  ;;  %v1516_v17 = vpop.f32.mrf.mxu1 }
 0x214   : > { %v1884_v19 = vadd.f32 %v488_v16, %v412_v12 }
 0x216   : > { %729 = vrot.lane.b32.xlu0 %v1884_v19, %s1635_s13  ;;  %1518 = vmatpush3.xpose.msk.msra.mxu1 %vm562_vm3, %v1884_v19 }
 0x217   : > { %1522 = vmatprep.subr.mxu1 %v1633_v6 }
 0x219   : > { %1520 = vmatmul.mubr.msk.f32.vlgmr.msra.gmra.mxu1 %vm562_vm3, %v1890_v20 }
 0x21a   : > { %1523 = vmatpush3.msra.mxu1 %v1893_v21  ;;  %1524 = vmatprep.mubr.msk.f32.mxu1 %vm1634_vm0, %v1633_v6 }
 0x21b   : > { %1527 = vmatprep.subr.mxu1 %v1633_v6 }
 0x288   : > { %v730_v36 = vpop.permute.xlu0 %729 }
 0x2d9   : > { %v635_v23 = vpop.f32.mrf.mxu1 }
 0x2da   : > { %v639_v24 = vmul.f32 0.17677669, %v635_v23 }
 0x2db   : > { %v1521_v25 = vpop.f32.mrf.mxu1 }
 0x2dc   : > { %v641_v26 = vsel %vm640_vm4, %v639_v24, -1e+09 }
 0x2dd   : > { %v643_v27 = vsel %vm642_vm5, %v641_v26, -inf }
 0x2de   : > { %644 = vmax.xlane.f32.xlu1 %v643_v27 }
 0x367   : > { %v645_v28 = vpop.xlane.xlu1 %644 }
 0x368   : > { %v646_v29 = vsub.f32 %v641_v26, %v645_v28 }
 0x36a   : > { %v647_v30 = vmul.f32 1.442695, %v646_v29  ;;  %v1260_v29 = vld [vmem:[%s2054_s6 + $0x70] sm:$0xff] }
 0x36c   : > { %1609 = vpow2.f32 %v647_v30  ;;  %v1259_v30 = vld [vmem:[%s2054_s6 + $0x68] sm:$0xff] }
 0x379   : > { %v1610_v31 = vpop.eup %1609 }
 0x37a   : > { %v649_v32 = vsel %vm642_vm5, %v1610_v31, 0.0 }
 0x37b   : > { %650 = vadd.xlane.f32.xlu1 %v649_v32  ;;  %v1257_v32 = vld [vmem:[%s2054_s6 + $0x58] sm:$0xff] }
 0x38c   : > { %727 = vrot.lane.b32.xlu1 %v1890_v20, %s1635_s13 }
 0x404   : > { %v651_v33 = vpop.xlane.xlu1 %650 }
 0x405   : > { %1611 = vrcp.f32 %v651_v33  ;;  %v1256_v33 = vld [vmem:[%s2054_s6 + $0x50] sm:$0xff] }
 0x408   : > { %v728_v37 = vpop.permute.xlu1 %727 }
 0x412   : > { %v1612_v34 = vpop.eup %1611 }
 0x413   : > { %v653_v35 = vmul.f32 %v1612_v34, %v1610_v31  ;;  %v1258_v31 = vld [vmem:[%s2054_s6 + $0x60] sm:$0xff]  ;;  %v1255_v34 = vld [vmem:[%s2054_s6 + $0x48] sm:$0xff] }
 0x415   : > { %1525 = vmatmul.mubr.msk.f32.vlgmr.msra.gmra.mxu1 %vm642_vm5, %v653_v35  ;;  %v1254_v35 = vld [vmem:[%s2054_s6 + $0x40] sm:$0xff] }
 0x416   : > { %1528 = vmatpush3.xpose.msk.msra.mxu1 %vm562_vm3, %v730_v36  ;;  %1529 = vmatprep.mubr.msk.f32.mxu1 %vm1634_vm0, %v1633_v6  ;;  %v1253_v36 = vld [vmem:[%s2054_s6 + $0x38] sm:$0xff] }
 0x417   : > { %1532 = vmatprep.subr.mxu1 %v1633_v6 }
 0x419   : > { %1530 = vmatmul.mubr.msk.f32.vlgmr.msra.gmra.mxu1 %vm562_vm3, %v728_v37  ;;  %v1252_v37 = vld [vmem:[%s2054_s6 + $0x30] sm:$0xff] }
 0x41a   : > { %1534 = vmatprep.mubr.msk.f32.mxu1 %vm1634_vm0, %v1633_v6 }
 0x4d5   : > { %v1922_v38 = vpop.f32.mrf.mxu1 }
 0x4d7   : > { %v1526_v39 = vpop.f32.mrf.mxu1 }
 0x4d8   : > { %v1251_v39 = vld [vmem:[%s2054_s6 + $0x28] sm:$0xff] }
 0x4d9   : > { %v801_v40 = vpop.f32.mrf.mxu1 }
 0x4da   : > { %v805_v41 = vmul.f32 0.17677669, %v801_v40  ;;  %v1250_v40 = vld [vmem:[%s2054_s6 + $0x20] sm:$0xff] }
 0x4db   : > { %v1531_v42 = vpop.f32.mrf.mxu1 }
 0x4dc   : > { %v806_v43 = vsel %vm640_vm4, %v805_v41, -1e+09  ;;  %v1249_v41 = vld [vmem:[%s2054_s6 + $0x18] sm:$0xff]  ;;  %v1248_v42 = vld [vmem:[%s2054_s6 + $0x10] sm:$0xff] }
 0x4dd   : > { %v807_v44 = vsel %vm642_vm5, %v806_v43, -inf }
 0x4de   : > { %808 = vmax.xlane.f32.xlu1 %v807_v44  ;;  %v1246_v44 = vld [vmem:[%s2054_s6] sm:$0xff] }
 0x4ef   : > { %897 = vrot.lane.b32.xlu1 %v1884_v19, %s1636_s17 }
 0x4f3   : > { %895 = vrot.lane.b32.xlu1 %v1890_v20, %s1636_s17 }
 0x567   : > { %v809_v45 = vpop.xlane.xlu1 %808 }
 0x568   : > { %v810_v46 = vsub.f32 %v806_v43, %v809_v45  ;;  %v1247_v43 = vld [vmem:[%s2054_s6 + $0x8] sm:$0xff] }
 0x56a   : > { %v811_v47 = vmul.f32 1.442695, %v810_v46 }
 0x56b   : > { %v898_v53 = vpop.permute.xlu1 %897 }
 0x56c   : > { %1613 = vpow2.f32 %v811_v47 }
 0x56f   : > { %v896_v55 = vpop.permute.xlu1 %895 }
 0x579   : > { %v1614_v48 = vpop.eup %1613 }
 0x57a   : > { %v813_v49 = vsel %vm642_vm5, %v1614_v48, 0.0 }
 0x57b   : > { %814 = vadd.xlane.f32.xlu0 %v813_v49 }
 0x591   : > { %819 = vrot.lane.b32.xlu0 %v1893_v21, %s1635_s13 }
 0x604   : > { %v815_v50 = vpop.xlane.xlu0 %814 }
 0x605   : > { %1615 = vrcp.f32 %v815_v50 }
 0x608   : > { %v820_v51 = vpop.permute.xlu0 %819 }
 0x609   : > { %1533 = vmatpush3.msra.mxu1 %v820_v51 }
 0x60a   : > { %1537 = vmatprep.subr.mxu1 %v1633_v6 }
 0x612   : > { %v1616_v52 = vpop.eup %1615 }
 0x613   : > { %v817_v54 = vmul.f32 %v1616_v52, %v1614_v48 }
 0x615   : > { %1535 = vmatmul.mubr.msk.f32.vlgmr.msra.gmra.mxu1 %vm642_vm5, %v817_v54 }
 0x616   : > { %1538 = vmatpush3.xpose.msk.msra.mxu1 %vm562_vm3, %v898_v53  ;;  %1539 = vmatprep.mubr.msk.f32.mxu1 %vm1634_vm0, %v1633_v6  ;;  %v1429_v53 = vld [vmem:[%s2055_s7] ss:$0 sm:$0xff] }
 0x617   : > { %1542 = vmatprep.subr.mxu1 %v1633_v6 }
 0x619   : > { %1540 = vmatmul.mubr.msk.f32.vlgmr.msra.gmra.mxu1 %vm562_vm3, %v896_v55 }
 0x61a   : > { %1544 = vmatprep.mubr.msk.f32.mxu1 %vm1634_vm0, %v1633_v6 }
 0x6d5   : > { %v891_v56 = vpop.f32.mrf.mxu1 }
 0x6d7   : > { %v1536_v57 = vpop.f32.mrf.mxu1 }
 0x6d9   : > { %v969_v58 = vpop.f32.mrf.mxu1 }
 0x6da   : > { %v973_v59 = vmul.f32 0.17677669, %v969_v58 }
 0x6db   : > { %v1541_v60 = vpop.f32.mrf.mxu1 }
 0x6dc   : > { %v974_v61 = vsel %vm640_vm4, %v973_v59, -1e+09 }
 0x6dd   : > { %v975_v62 = vsel %vm642_vm5, %v974_v61, -inf }
 0x6de   : > { %976 = vmax.xlane.f32.xlu1 %v975_v62 }
 0x6ef   : > { %1064 = vrot.lane.b32.xlu1 %v1884_v19, %s1637_s18 }
 0x6f3   : > { %1062 = vrot.lane.b32.xlu1 %v1890_v20, %s1637_s18 }
 0x767   : > { %v977_v63 = vpop.xlane.xlu1 %976 }
 0x768   : > { %v978_v1 = vsub.f32 %v974_v61, %v977_v63 }
 0x76a   : > { %v979_v2 = vmul.f32 1.442695, %v978_v1 }
 0x76b   : > { %v1065_v3 = vpop.permute.xlu1 %1064 }
 0x76c   : > { %1617 = vpow2.f32 %v979_v2 }
 0x76f   : > { %v1063_v11 = vpop.permute.xlu1 %1062 }
 0x779   : > { %v1618_v4 = vpop.eup %1617 }
 0x77a   : > { %v981_v5 = vsel %vm642_vm5, %v1618_v4, 0.0 }
 0x77b   : > { %982 = vadd.xlane.f32.xlu0 %v981_v5 }
 0x791   : > { %986 = vrot.lane.b32.xlu0 %v1893_v21, %s1636_s17 }
 0x804   : > { %v983_v7 = vpop.xlane.xlu0 %982 }
 0x805   : > { %1619 = vrcp.f32 %v983_v7 }
 0x808   : > { %v987_v8 = vpop.permute.xlu0 %986 }
 0x809   : > { %1543 = vmatpush3.msra.mxu1 %v987_v8 }
 0x80a   : > { %1547 = vmatprep.subr.mxu1 %v1633_v6 }
 0x812   : > { %v1620_v9 = vpop.eup %1619 }
 0x813   : > { %v985_v10 = vmul.f32 %v1620_v9, %v1618_v4 }
 0x815   : > { %1545 = vmatmul.mubr.msk.f32.vlgmr.msra.gmra.mxu1 %vm642_vm5, %v985_v10 }
 0x816   : > { %1548 = vmatpush3.xpose.msk.msra.mxu1 %vm562_vm3, %v1065_v3  ;;  %1549 = vmatprep.mubr.msk.f32.mxu1 %vm1634_vm0, %v1633_v6 }
 0x817   : > { %1552 = vmatprep.subr.mxu1 %v1633_v6 }
 0x819   : > { %1550 = vmatmul.mubr.msk.f32.vlgmr.msra.gmra.mxu1 %vm562_vm3, %v1063_v11 }
 0x81a   : > { %1554 = vmatprep.mubr.msk.f32.mxu1 %vm1634_vm0, %v1633_v6 }
 0x8d5   : > { %v1058_v12 = vpop.f32.mrf.mxu1 }
 0x8d7   : > { %v1546_v13 = vpop.f32.mrf.mxu1 }
 0x8d9   : > { %v1136_v14 = vpop.f32.mrf.mxu1 }
 0x8da   : > { %v1140_v15 = vmul.f32 0.17677669, %v1136_v14 }
 0x8db   : > { %v1551_v16 = vpop.f32.mrf.mxu1 }
 0x8dc   : > { %v1141_v17 = vsel %vm640_vm4, %v1140_v15, -1e+09 }
 0x8dd   : > { %v1142_v18 = vsel %vm642_vm5, %v1141_v17, -inf }
 0x8de   : > { %1143 = vmax.xlane.f32.xlu0 %v1142_v18 }
 0x8f4   : > { %1153 = vrot.lane.b32.xlu0 %v1893_v21, %s1637_s18  ;;  %v1261_v21 = vld [vmem:[%s2054_s6 + $0x78] sm:$0xff] }
 0x8f5   : > { %1558 = vmatpush3.msra.mxu0 %v1261_v21 }
 0x8f6   : > { %1559 = vmatprep.subr.mxu0 %v1633_v6 }
 0x8f7   : > { %1560 = vmatpush3.msra.mxu0 %v1260_v29 }
 0x8f8   : > { %1234 = vrot.lane.b32.xlu0 %v1058_v12, %s1636_s17  ;;  %1561 = vmatprep.subr.mxu0 %v1633_v6 }
 0x8f9   : > { %1562 = vmatpush3.msra.mxu0 %v1259_v30 }
 0x8fa   : > { %1563 = vmatprep.subr.mxu0 %v1633_v6 }
 0x8fb   : > { %1564 = vmatpush3.msra.mxu0 %v1258_v31 }
 0x8fc   : > { %1565 = vmatprep.subr.mxu0 %v1633_v6 }
 0x8fd   : > { %1566 = vmatpush3.msra.mxu0 %v1257_v32 }
 0x8fe   : > { %1567 = vmatprep.subr.mxu0 %v1633_v6 }
 0x8ff   : > { %1568 = vmatpush3.msra.mxu0 %v1256_v33 }
 0x900   : > { %1569 = vmatprep.subr.mxu0 %v1633_v6 }
 0x901   : > { %1570 = vmatpush3.msra.mxu0 %v1255_v34 }
 0x902   : > { %1571 = vmatprep.subr.mxu0 %v1633_v6 }
 0x903   : > { %1572 = vmatpush3.msra.mxu0 %v1254_v35 }
 0x904   : > { %1573 = vmatprep.subr.mxu0 %v1633_v6 }
 0x905   : > { %1574 = vmatpush3.msra.mxu0 %v1253_v36 }
 0x906   : > { %1575 = vmatprep.subr.mxu0 %v1633_v6 }
 0x907   : > { %1576 = vmatpush3.msra.mxu0 %v1252_v37 }
 0x908   : > { %1577 = vmatprep.subr.mxu0 %v1633_v6 }
 0x909   : > { %1578 = vmatpush3.msra.mxu0 %v1251_v39 }
 0x90a   : > { %1579 = vmatprep.subr.mxu0 %v1633_v6 }
 0x90b   : > { %1580 = vmatpush3.msra.mxu0 %v1250_v40 }
 0x90c   : > { %1581 = vmatprep.subr.mxu0 %v1633_v6 }
 0x90d   : > { %1582 = vmatpush3.msra.mxu0 %v1249_v41 }
 0x90e   : > { %1583 = vmatprep.subr.mxu0 %v1633_v6 }
 0x90f   : > { %1584 = vmatpush3.msra.mxu0 %v1248_v42 }
 0x910   : > { %1585 = vmatprep.subr.mxu0 %v1633_v6 }
 0x911   : > { %1586 = vmatpush3.msra.mxu0 %v1247_v43 }
 0x912   : > { %1587 = vmatprep.subr.mxu0 %v1633_v6 }
 0x913   : > { %1588 = vmatpush3.msra.mxu0 %v1246_v44 }
 0x967   : > { %v1144_v19 = vpop.xlane.xlu0 %1143 }
 0x968   : > { %v1145_v20 = vsub.f32 %v1141_v17, %v1144_v19 }
 0x96a   : > { %v1146_v23 = vmul.f32 1.442695, %v1145_v20 }
 0x96b   : > { %v1154_v24 = vpop.permute.xlu0 %1153 }
 0x96c   : > { %1621 = vpow2.f32 %v1146_v23  ;;  %1553 = vmatpush3.msra.mxu1 %v1154_v24 }
 0x96f   : > { %v1235_v49 = vpop.permute.xlu0 %1234 }
 0x979   : > { %v1622_v25 = vpop.eup %1621 }
 0x97a   : > { %v1148_v26 = vsel %vm642_vm5, %v1622_v25, 0.0 }
 0x97b   : > { %1149 = vadd.xlane.f32.xlu1 %v1148_v26 }
 0x98c   : > { %1230 = vrot.lane.b32.xlu1 %v891_v56, %s1637_s18 }
 0xa04   : > { %v1150_v22 = vpop.xlane.xlu1 %1149 }
 0xa05   : > { %1623 = vrcp.f32 %v1150_v22 }
 0xa08   : > { %v1231_v47 = vpop.permute.xlu1 %1230 }
 0xa09   : > { %v1241_v48 = vsel %vm562_vm3, %v1922_v38, %v1231_v47 }
 0xa0a   : > { %v1243_v50 = vsel %vm1242_vm6, %v1241_v48, %v1235_v49 }
 0xa12   : > { %v1624_v27 = vpop.eup %1623 }
 0xa13   : > { %v1152_v28 = vmul.f32 %v1624_v27, %v1622_v25 }
 0xa15   : > { %1555 = vmatmul.mubr.msk.f32.vlgmr.msra.gmra.mxu1 %vm642_vm5, %v1152_v28 }
 0xad5   : > { %v1225_v45 = vpop.f32.mrf.mxu1 }
 0xad6   : > { %1238 = vrot.lane.b32.xlu1 %v1225_v45, %s1635_s13 }
 0xad7   : > { %v1556_v46 = vpop.f32.mrf.mxu1 }
 0xb48   : > { %v1239_v51 = vpop.permute.xlu1 %1238 }
 0xb49   : > { %v1245_v6 = vsel %vm1244_vm7, %v1243_v50, %v1239_v51 }
 0xb4a   : > { %1590 = vmatmul.mubr.f32.vlgmr.msra.gmra.mxu0 %v1245_v6 }
 0xc0a   : > { %v1328_v52 = vpop.f32.mrf.mxu0 }
 0xc0b   : > { %v1332_v54 = vadd.f32 %v1328_v52, %v1697_v0 }
 0xc0c   : > { %v1591_v55 = vpop.f32.mrf.mxu0 }
 0xc0d   : > { %v1340_v38 = vadd.f32 %v1429_v53, %v1332_v54 }
 0xc0f   : > { %1341 = vst [vmem:[%s317_s16] sm:$0xff] %v1340_v38 }
 0xc10 PF: > { %s18_s27 = sadd.s32 1, %s1631_s27  }
 0xc11   : > { %p15_p4 = scmp.ge.s32.totalorder %s18_s27, 4  }
 0xc13   :  { %17 = sbr.rel (!%p15_p4) target bundleno = 1 (0x1), region = 85 }

// kernel: decoder_layer_forward.5
= control target key start
LH: loop header
LB: loop body
LE: loop exit
PB: predicated region body
PF: predicated region fallthrough
CT: control target
= control target key end

     0   :  { %12 = vsyncpa [#allocation3], 0  ;;  %s1241_s0 = inlined_call_operand.hbm [shape: f32[2,8,128], index: 0, kind: input, shape index: {}, may-alias: {0,7}]   ;;  %s1242_s1 = inlined_call_operand.vmem [shape: f32[1,128], index: 1, kind: input, shape index: {}]   ;;  %s1243_s2 = inlined_call_operand.vmem [shape: f32[1,128], index: 2, kind: input, shape index: {}]   ;;  %s1244_s3 = inlined_call_operand.vmem [shape: f32[128,256], index: 3, kind: input, shape index: {}]   ;;  %s1245_s4 = inlined_call_operand.vmem [shape: f32[1,256], index: 4, kind: input, shape index: {}]   ;;  %s1246_s5 = inlined_call_operand.vmem [shape: f32[256,128], index: 5, kind: input, shape index: {}]   ;;  %s1247_s6 = inlined_call_operand.vmem [shape: f32[1,128], index: 6, kind: input, shape index: {}]   ;;  %s1248_s7 = inlined_call_operand.hbm [shape: f32[2,8,128], index: 7, kind: output, shape index: {}, may-alias: {0,7}]  }
   0x1   :  { %14 = vsyncpa [#allocation3 + $0x1], 0 }
   0x2   :  { %15 = vsyncpa [#allocation4], 0 }
   0x3   :  { %17 = vsyncpa [#allocation4 + $0x1], 0  ;;  %s882_s24 = smov 0   ;;  %s884_s25 = smov 0  }
   0x4   :  { %s886_s26 = smov 0   ;;  %s888_s27 = smov 0  }
   0x5 LB: > { %s903_s28 = sadd.s32 4294967295, %s837_s27   ;;  %s644_s29 = sadd.s32 4294967294, %s837_s27   ;;  %s837_s27 = sphi %s888_s27, %s1265_s27   ;;  %s833_s26 = sphi %s886_s26, %s1264_s26   ;;  %s829_s25 = sphi %s884_s25, %s1263_s25   ;;  %s825_s24 = sphi %s882_s24, %s1262_s24  }
   0x6   : > { %s907_s30 = sadd.s32 1, %s837_s27   ;;  %s30_s8 = sadd.s32 1, %s833_s26 }
   0x7   : > { %s27_s9 = ssub.s32 %s837_s27, %s907_s30  ;;  %p37_p0 = scmp.ne.s32.totalorder %s833_s26, %s829_s25 }
   0x8   : > { %p28_p1 = scmp.eq.s32.totalorder %s27_s9, 0  ;;  %p38_p2 = scmp.eq.s32.totalorder %s837_s27, 0 }
   0x9   : > { %p43_p3 = scmp.ne.s32.totalorder %s829_s25, %s825_s24  ;;  %p44_p4 = scmp.eq.s32.totalorder %s903_s28, 0 }
   0xa   : > { %s919_s10 = scalar_select %p28_p1, %s833_s26, %s30_s8  }
   0xb   : > { %p921_p5 = por %p38_p2, %p37_p0  ;;  %p925_p6 = por %p44_p4, %p43_p3 }
   0xc   : > { %p193_p7 = scmp.eq.s32.totalorder %s903_s28, 1  ;;  %p199_p8 = scmp.eq.s32.totalorder %s644_s29, 1 }
   0xd   : > { %s1252_s12 = scalar_select %p925_p6, 1, 0 }
   0xe   : > { %p706_p10 = scmp.lt.s32.totalorder %s837_s27, 2  ;;  %p932_p11 = por %p193_p7, %p37_p0 }
   0xf   : > { %p936_p12 = por %p199_p8, %p43_p3  ;;  %s237_s15 = sand.u32 1, %s833_s26  }
  0x10   : > { %s1253_s13 = scalar_select %p932_p11, 1, 0 }
  0x11   : > { %s1254_s14 = scalar_select %p936_p12, 1, 0 }
  0x12   : > { %s648_s16 = sshll.u32 %s837_s27, 7  ;;  %s647_s17 = sshll.u32 %s237_s15, 3 }
  0x13   : > { %s945_s20 = scalar_lea.hbm %s1241_s0, %s648_s16  ;;  %s241_s21 = scalar_lea.vmem [#allocation2], %s647_s17 }
  0x14   : > { %s248_s22 = sshll.u32 %s241_s21, 4  ;;  %p949_p13 = pnand %p706_p10, %p921_p5  ;;  %s953_s22 = int_to_ptr.vmem [resolvable:$true] %s248_s22 }
  0x15   : > { %s238_s29 = scalar_lea.sflag [#allocation3], %s237_s15  ;;  %s745_s8 = scalar_lea.hbm %s945_s20, 128 }
  0x16   : > { %p746_p2 = scmp.ne.s32.totalorder %s945_s20, %s745_s8  ;;  %p747_p3 = pneg %p949_p13 }
  0x17   : > { %s750_s11 = scalar_lea.hbm %s1241_s0, 256  ;;  %p751_p5 = scmp.lt.s32.totalorder %s945_s20, %s1241_s0 }
  0x18   : > { %p748_p4 = pnand %p747_p3, %p746_p2  ;;  %p752_p8 = scmp.lt.s32.totalorder %s750_s11, %s745_s8 }
  0x1a   : > { %p749_p7 = pneg %p748_p4  ;;  %p753_p10 = por %p752_p8, %p751_p5 }
  0x1c   : > { %p754_p9 = pnand %p753_p10, %p749_p7 }
  0x1e   : > { %757 = shalt.err (!%p754_p9)
}
  0x1f   : > { %s758_s15 = scalar_lea.vmem %s953_s22, 128  ;;  %s839_s19 = smov [#allocation2]  }
  0x20   : > { %p759_p0 = scmp.ne.s32.totalorder %s953_s22, %s758_s15  ;;  %s763_s21 = sshll.u32 %s839_s19, 4  ;;  %s764_s21 = int_to_ptr.vmem [resolvable:$false] %s763_s21 }
  0x21   : > { %s765_s9 = scalar_lea.vmem %s764_s21, 256  ;;  %p766_p4 = scmp.lt.s32.totalorder %s953_s22, %s764_s21 }
  0x22   : > { %p761_p1 = pnand %p759_p0, %p747_p3  ;;  %p767_p12 = scmp.lt.s32.totalorder %s765_s9, %s758_s15 }
  0x24   : > { %p762_p2 = pneg %p761_p1  ;;  %p768_p11 = por %p767_p12, %p766_p4 }
  0x26   : > { %p769_p6 = pnand %p768_p11, %p762_p2 }
  0x28   : > { %772 = shalt.err (!%p769_p6)
}
  0x29   : > { %701 = dma.hbm_to_vmem [thread:$0]  (!%p949_p13), %s945_s20, 128, %s953_s22, %s238_s29  }
  0x2a   : > { %p1256_p9 = scmp.lt.s32.totalorder %s837_s27, 3  ;;  %p1257_p7 = scmp.ge.s32.totalorder %s837_s27, 1 }
  0x2c   : > { %p254_p0 = pnand %p1257_p7, %p1256_p9 }
  0x2d   : > { %s980_s8 = sand.u32 (!%p254_p0), 1, %s829_s25   ;;  %p1258_p6 = scmp.ne.s32.totalorder (!%p254_p0), %s1252_s12, 0 }
  0x2e   : > { %257 = sbr.rel (%p254_p0) target bundleno = 789 (0x315), region = 48  ;;  %s650_s16 = sshll.u32 (!%p254_p0), %s980_s8, 3 }
  0x2f   : > { %s260_s11 = scalar_lea.sflag (!%p254_p0), [#allocation3], %s980_s8  ;;  %s263_s23 = scalar_lea.vmem (!%p254_p0), [#allocation2], %s650_s16 }
  0x33   : > { %816 = dma.done.wait (%p1258_p6), %s260_s11, 128  }
  0x34   : > { %818 = vsyncadd (%p1258_p6), %s260_s11, 4294967168  ;;  %v990_v0 = vld [vmem:[%s263_s23] sm:$0xff]  ;;  %v362_v5 = vld [vmem:[%s1244_s3 + $0xf8] sm:$0xff]  ;;  %v840_v22 = vmov 0.0   ;;  %s656_s17 = sshll.u32 %s903_s28, 7  ;;  %s293_s18 = scalar_lea.vmem [#allocation5], %s650_s16 }
  0x35   : > { %297 = vadd.xlane.f32.xlu0 %v990_v0  ;;  %375 = vmatprep.subr.mxu0 %v362_v5  ;;  %v361_v6 = vld [vmem:[%s1244_s3 + $0xf0] sm:$0xff]  ;;  %v360_v7 = vld [vmem:[%s1244_s3 + $0xe8] sm:$0xff]  ;;  %v359_v8 = vld [vmem:[%s1244_s3 + $0xe0] sm:$0xff]  ;;  %s574_s15 = sshll.u32 %s293_s18, 4  ;;  %s572_s9 = scalar_lea.hbm %s1248_s7, %s656_s17  ;;  %s575_s15 = int_to_ptr.vmem [resolvable:$true] %s574_s15 }
  0x36   : > { %376 = vmatpush1.msra.mxu0 %v361_v6  ;;  %v358_v9 = vld [vmem:[%s1244_s3 + $0xd8] sm:$0xff]  ;;  %v357_v10 = vld [vmem:[%s1244_s3 + $0xd0] sm:$0xff]  ;;  %v356_v11 = vld [vmem:[%s1244_s3 + $0xc8] sm:$0xff]  ;;  %439 = vmatprep.mubr.f32.mxu0 %v840_v22  ;;  %s561_s11 = scalar_lea.sflag [#allocation4], %s980_s8  ;;  %s773_s23 = scalar_lea.vmem %s575_s15, 128 }
  0x37   : > { %377 = vmatprep.subr.mxu0 %v360_v7  ;;  %v355_v12 = vld [vmem:[%s1244_s3 + $0xc0] sm:$0xff]  ;;  %v354_v13 = vld [vmem:[%s1244_s3 + $0xb8] sm:$0xff]  ;;  %v353_v14 = vld [vmem:[%s1244_s3 + $0xb0] sm:$0xff]  ;;  %p774_p11 = scmp.ne.s32.totalorder %s575_s15, %s773_s23  ;;  %p1259_p12 = scmp.ne.s32.totalorder %s1253_s13, 0 }
  0x38   : > { %378 = vmatpush1.msra.mxu0 %v359_v8  ;;  %v352_v15 = vld [vmem:[%s1244_s3 + $0xa8] sm:$0xff]  ;;  %v351_v16 = vld [vmem:[%s1244_s3 + $0xa0] sm:$0xff]  ;;  %v350_v17 = vld [vmem:[%s1244_s3 + $0x98] sm:$0xff]  ;;  %s841_s20 = smov [#allocation5]  }
  0x39   : > { %379 = vmatprep.subr.mxu0 %v358_v9  ;;  %v349_v18 = vld [vmem:[%s1244_s3 + $0x90] sm:$0xff]  ;;  %v348_v19 = vld [vmem:[%s1244_s3 + $0x88] sm:$0xff]  ;;  %v347_v20 = vld [vmem:[%s1244_s3 + $0x80] sm:$0xff]  ;;  %p775_p13 = pnand %p774_p11, %p1259_p12  ;;  %s777_s28 = sshll.u32 %s841_s20, 4  ;;  %s778_s28 = int_to_ptr.vmem [resolvable:$false] %s777_s28 }
  0x3a   : > { %380 = vmatpush1.msra.mxu0 %v357_v10  ;;  %v346_v21 = vld [vmem:[%s1244_s3 + $0x78] sm:$0xff]  ;;  %v345_v23 = vld [vmem:[%s1244_s3 + $0x70] sm:$0xff]  ;;  %v344_v24 = vld [vmem:[%s1244_s3 + $0x68] sm:$0xff]  ;;  %s779_s16 = scalar_lea.vmem %s778_s28, 256  ;;  %p780_p3 = scmp.lt.s32.totalorder %s575_s15, %s778_s28 }
  0x3b   : > { %381 = vmatprep.subr.mxu0 %v356_v11  ;;  %v343_v25 = vld [vmem:[%s1244_s3 + $0x60] sm:$0xff]  ;;  %v342_v26 = vld [vmem:[%s1244_s3 + $0x58] sm:$0xff]  ;;  %v341_v27 = vld [vmem:[%s1244_s3 + $0x50] sm:$0xff]  ;;  %p776_p1 = pneg %p775_p13  ;;  %p781_p5 = scmp.lt.s32.totalorder %s779_s16, %s773_s23 }
  0x3c   : > { %382 = vmatpush1.msra.mxu0 %v355_v12  ;;  %v340_v28 = vld [vmem:[%s1244_s3 + $0x48] sm:$0xff]  ;;  %v339_v29 = vld [vmem:[%s1244_s3 + $0x40] sm:$0xff]  ;;  %v338_v30 = vld [vmem:[%s1244_s3 + $0x38] sm:$0xff] }
  0x3d   : > { %383 = vmatprep.subr.mxu0 %v354_v13  ;;  %v337_v31 = vld [vmem:[%s1244_s3 + $0x30] sm:$0xff]  ;;  %v336_v32 = vld [vmem:[%s1244_s3 + $0x28] sm:$0xff]  ;;  %v335_v33 = vld [vmem:[%s1244_s3 + $0x20] sm:$0xff]  ;;  %p782_p8 = por %p781_p5, %p780_p3 }
  0x3e   : > { %384 = vmatpush1.msra.mxu0 %v353_v14  ;;  %v334_v34 = vld [vmem:[%s1244_s3 + $0x18] sm:$0xff]  ;;  %v333_v35 = vld [vmem:[%s1244_s3 + $0x10] sm:$0xff]  ;;  %v332_v36 = vld [vmem:[%s1244_s3 + $0x8] sm:$0xff] }
  0x3f   : > { %385 = vmatprep.subr.mxu0 %v352_v15  ;;  %v331_v37 = vld [vmem:[%s1244_s3] sm:$0xff]  ;;  %v479_v38 = vld [vmem:[%s1246_s5 + $0xf8] sm:$0xff]  ;;  %v478_v40 = vld [vmem:[%s1246_s5 + $0xf0] sm:$0xff]  ;;  %p783_p10 = pnand %p782_p8, %p776_p1 }
  0x40   : > { %386 = vmatpush1.msra.mxu0 %v351_v16  ;;  %v463_v39 = vld [vmem:[%s1246_s5 + $0x78] sm:$0xff]  ;;  %659 = vmatprep.subr.mxu1 %v479_v38  ;;  %v462_v41 = vld [vmem:[%s1246_s5 + $0x70] sm:$0xff]  ;;  %v477_v42 = vld [vmem:[%s1246_s5 + $0xe8] sm:$0xff] }
  0x41   : > { %387 = vmatprep.subr.mxu0 %v350_v17  ;;  %660 = vmatpush3.msra.mxu1 %v463_v39  ;;  %v461_v43 = vld [vmem:[%s1246_s5 + $0x68] sm:$0xff]  ;;  %v476_v44 = vld [vmem:[%s1246_s5 + $0xe0] sm:$0xff]  ;;  %v475_v46 = vld [vmem:[%s1246_s5 + $0xd8] sm:$0xff] }
  0x42   : > { %388 = vmatpush1.msra.mxu0 %v349_v18  ;;  %661 = vmatprep.subr.mxu1 %v478_v40  ;;  %v460_v45 = vld [vmem:[%s1246_s5 + $0x60] sm:$0xff]  ;;  %v459_v47 = vld [vmem:[%s1246_s5 + $0x58] sm:$0xff]  ;;  %v474_v48 = vld [vmem:[%s1246_s5 + $0xd0] sm:$0xff] }
  0x43   : > { %389 = vmatprep.subr.mxu0 %v348_v19  ;;  %662 = vmatpush3.msra.mxu1 %v462_v41  ;;  %v458_v49 = vld [vmem:[%s1246_s5 + $0x50] sm:$0xff]  ;;  %v473_v50 = vld [vmem:[%s1246_s5 + $0xc8] sm:$0xff]  ;;  %v472_v52 = vld [vmem:[%s1246_s5 + $0xc0] sm:$0xff] }
  0x44   : > { %390 = vmatpush1.msra.mxu0 %v347_v20  ;;  %663 = vmatprep.subr.mxu1 %v477_v42  ;;  %v457_v51 = vld [vmem:[%s1246_s5 + $0x48] sm:$0xff]  ;;  %v456_v53 = vld [vmem:[%s1246_s5 + $0x40] sm:$0xff]  ;;  %v471_v54 = vld [vmem:[%s1246_s5 + $0xb8] sm:$0xff] }
  0x45   : > { %391 = vmatprep.subr.mxu0 %v346_v21  ;;  %664 = vmatpush3.msra.mxu1 %v461_v43  ;;  %v455_v55 = vld [vmem:[%s1246_s5 + $0x38] sm:$0xff]  ;;  %v470_v56 = vld [vmem:[%s1246_s5 + $0xb0] sm:$0xff]  ;;  %v469_v58 = vld [vmem:[%s1246_s5 + $0xa8] sm:$0xff]  ;;  %v365_v21 = vlaneseq }
  0x46   : > { %392 = vmatpush1.msra.mxu0 %v345_v23  ;;  %665 = vmatprep.subr.mxu1 %v476_v44  ;;  %v454_v57 = vld [vmem:[%s1246_s5 + $0x30] sm:$0xff]  ;;  %v453_v59 = vld [vmem:[%s1246_s5 + $0x28] sm:$0xff]  ;;  %v468_v60 = vld [vmem:[%s1246_s5 + $0xa0] sm:$0xff] }
  0x47   : > { %393 = vmatprep.subr.mxu0 %v344_v24  ;;  %666 = vmatpush3.msra.mxu1 %v460_v45  ;;  %v452_v61 = vld [vmem:[%s1246_s5 + $0x20] sm:$0xff]  ;;  %v467_v14 = vld [vmem:[%s1246_s5 + $0x98] sm:$0xff]  ;;  %v450_v16 = vld [vmem:[%s1246_s5 + $0x10] sm:$0xff]  ;;  %v366_v22 = vshrl.u32 %v365_v21, 7 }
  0x48   : > { %394 = vmatpush1.msra.mxu0 %v343_v25  ;;  %667 = vmatprep.subr.mxu1 %v475_v46  ;;  %v652_v8 = vld [vmem:[%s1242_s1] ss:$0 sm:$0xff]  ;;  %v451_v15 = vld [vmem:[%s1246_s5 + $0x18] sm:$0xff]  ;;  %v465_v17 = vld [vmem:[%s1246_s5 + $0x88] sm:$0xff] }
  0x49   : > { %395 = vmatprep.subr.mxu0 %v342_v26  ;;  %668 = vmatpush3.msra.mxu1 %v459_v47  ;;  %v653_v11 = vld [vmem:[%s1243_s2] ss:$0 sm:$0xff]  ;;  %v449_v18 = vld [vmem:[%s1246_s5 + $0x8] sm:$0xff]  ;;  %v367_v23 = vsub.s32 0, %v366_v22  ;;  %v371_v25 = vsub.s32 1, %v366_v22 }
  0x4a   : > { %396 = vmatpush1.msra.mxu0 %v341_v27  ;;  %669 = vmatprep.subr.mxu1 %v474_v48  ;;  %v464_v19 = vld [vmem:[%s1246_s5 + $0x80] sm:$0xff] }
  0x4b   : > { %397 = vmatprep.subr.mxu0 %v340_v28  ;;  %670 = vmatpush3.msra.mxu1 %v458_v49  ;;  %v448_v20 = vld [vmem:[%s1246_s5] sm:$0xff] }
  0x4c   : > { %398 = vmatpush1.msra.mxu0 %v339_v29  ;;  %671 = vmatprep.subr.mxu1 %v473_v50  ;;  %v363_v24 = vld [vmem:[%s1245_s4] sm:$0x3] }
  0x4d   : > { %399 = vmatprep.subr.mxu0 %v338_v30  ;;  %672 = vmatpush3.msra.mxu1 %v457_v51  ;;  %v368_v26 = vrot.slane %v363_v24, %v367_v23  ;;  %v372_v27 = vrot.slane %v363_v24, %v371_v25 }
  0x4e   : > { %400 = vmatpush1.msra.mxu0 %v337_v31  ;;  %673 = vmatprep.subr.mxu1 %v472_v52 }
  0x4f   : > { %401 = vmatprep.subr.mxu0 %v336_v32  ;;  %674 = vmatpush3.msra.mxu1 %v456_v53 }
  0x50   : > { %402 = vmatpush1.msra.mxu0 %v335_v33  ;;  %675 = vmatprep.subr.mxu1 %v471_v54 }
  0x51   : > { %403 = vmatprep.subr.mxu0 %v334_v34  ;;  %676 = vmatpush3.msra.mxu1 %v455_v55 }
  0x52   : > { %404 = vmatpush1.msra.mxu0 %v333_v35  ;;  %677 = vmatprep.subr.mxu1 %v470_v56 }
  0x53   : > { %405 = vmatprep.subr.mxu0 %v332_v36  ;;  %678 = vmatpush3.msra.mxu1 %v454_v57 }
  0x54   : > { %406 = vmatpush1.msra.mxu0 %v331_v37  ;;  %679 = vmatprep.subr.mxu1 %v469_v58  ;;  %v654_v37 = vld [vmem:[%s1247_s6] ss:$0 sm:$0xff] }
  0x55   : > { %680 = vmatpush3.msra.mxu1 %v453_v59 }
  0x56   : > { %681 = vmatprep.subr.mxu1 %v468_v60 }
  0x57   : > { %682 = vmatpush3.msra.mxu1 %v452_v61 }
  0x58   : > { %683 = vmatprep.subr.mxu1 %v467_v14 }
  0x59   : > { %684 = vmatpush3.msra.mxu1 %v451_v15 }
  0xbe   : > { %v298_v1 = vpop.xlane.xlu0 %297 }
  0xbf   : > { %v300_v2 = vmul.f32 0.0078125, %v298_v1 }
  0xc1   : > { %v994_v3 = vsub.f32 %v990_v0, %v300_v2 }
  0xc3   : > { %v302_v4 = vmul.f32 %v994_v3, %v994_v3  ;;  %v313_v9 = vmul.f32 %v652_v8, %v994_v3  ;;  %v466_v3 = vld [vmem:[%s1246_s5 + $0x90] sm:$0xff] }
  0xc4   : > { %685 = vmatprep.subr.mxu1 %v466_v3 }
  0xc5   : > { %303 = vadd.xlane.f32.xlu0 %v302_v4  ;;  %686 = vmatpush3.msra.mxu1 %v450_v16 }
  0xc6   : > { %687 = vmatprep.subr.mxu1 %v465_v17 }
  0xc7   : > { %688 = vmatpush3.msra.mxu1 %v449_v18 }
  0xc8   : > { %689 = vmatprep.subr.mxu1 %v464_v19 }
  0xc9   : > { %690 = vmatpush3.msra.mxu1 %v448_v20 }
 0x14e   : > { %v304_v62 = vpop.xlane.xlu0 %303 }
 0x14f   : > { %v306_v63 = vmul.f32 0.007874016, %v304_v62 }
 0x151   : > { %741 = vrsqrt.f32 %v306_v63  ;;  %vm316_vm0 = vcmp.eq.f32.partialorder %v306_v63, inf  ;;  %v319_v4 = vand.u32 2147483648, %v306_v63  ;;  %vm318_vm1 = vcmp.eq.f32.partialorder %v306_v63, 0.0 }
 0x15e   : > { %v742_v1 = vpop.eup %741 }
 0x15f   : > { %v315_v2 = vmul.f32 %v742_v1, %v306_v63 }
 0x161   : > { %v317_v5 = vsel %vm316_vm0, %v306_v63, %v315_v2 }
 0x162   : > { %v320_v6 = vsel %vm318_vm1, %v319_v4, %v317_v5 }
 0x163   : > { %v321_v7 = vadd.f32 1e-06, %v320_v6 }
 0x165   : > { %743 = vrcp.f32 %v321_v7 }
 0x172   : > { %v744_v10 = vpop.eup %743 }
 0x173   : > { %v323_v12 = vmul.f32 %v744_v10, %v313_v9 }
 0x175   : > { %v330_v13 = vadd.f32 %v653_v11, %v323_v12 }
 0x177   : > { %440 = vmatmul.mubr.f32.vlgmr.msra.gmra.mxu0 %v330_v13 }
 0x237   : > { %v441_v28 = vpop.f32.mrf.mxu0 }
 0x238   : > { %v442_v29 = vadd.f32 %v441_v28, %v368_v26 }
 0x239   : > { %v443_v30 = vpop.f32.mrf.mxu0 }
 0x23a   : > { %v444_v31 = vadd.f32 %v443_v30, %v372_v27  ;;  %v446_v33 = vmax.f32 %v442_v29, 0.0 }
 0x23c   : > { %v447_v32 = vmax.f32 %v444_v31, 0.0 }
 0x23e   : > { %544 = vmatprep.mubr.f32.mxu1 %v447_v32 }
 0x23f   : > { %545 = vmatmul.mubr.f32.vlgmr.msra.gmra.mxu1 %v446_v33 }
 0x2ff   : > { %v691_v34 = vpop.f32.mrf.mxu1 }
 0x301   : > { %v692_v35 = vpop.f32.mrf.mxu1 }
 0x302   : > { %v693_v36 = vadd.f32 %v692_v35, %v691_v34 }
 0x304   : > { %v550_v38 = vadd.f32 %v693_v36, %v990_v0 }
 0x306   : > { %v558_v39 = vadd.f32 %v654_v37, %v550_v38 }
 0x308   : > { %559 = vst [vmem:[%s293_s18] sm:$0xff] %v558_v39 }
 0x309   : > { %786 = shalt.err (!%p783_p10)
}
 0x30a   : > { %s787_s22 = scalar_lea.hbm %s572_s9, 128  ;;  %s791_s29 = scalar_lea.hbm %s1248_s7, 256 }
 0x30b   : > { %p788_p2 = scmp.ne.s32.totalorder %s572_s9, %s787_s22  ;;  %p792_p7 = scmp.lt.s32.totalorder %s572_s9, %s1248_s7 }
 0x30c   : > { %p793_p0 = scmp.lt.s32.totalorder %s791_s29, %s787_s22 }
 0x30d   : > { %p789_p4 = pnand %p788_p2, %p1259_p12 }
 0x30e   : > { %p794_p6 = por %p793_p0, %p792_p7 }
 0x30f   : > { %p790_p9 = pneg %p789_p4 }
 0x311   : > { %p795_p11 = pnand %p794_p6, %p790_p9 }
 0x313   : > { %798 = shalt.err (!%p795_p11)
}
 0x314   : > { %696 = dma.vmem_to_hbm [thread:$0]  (%p1259_p12), %s575_s15, 128, %s572_s9, %s561_s11  }
 0x315 PF: > { %s586_s19 = sand.u32 1, %s825_s24   ;;  %p1260_p13 = scmp.ne.s32.totalorder %s1254_s14, 0 }
 0x316   : > { %p1261_p1 = scmp.ge.s32.totalorder %s837_s27, 2  ;;  %s587_s21 = scalar_lea.sflag [#allocation4], %s586_s19 }
 0x318   : > { %p703_p3 = pnand %p1261_p1, %p1260_p13 }
 0x31a   : > { %p704_p5 = pneg %p703_p3 }
 0x31c   : > { %820 = dma.done.wait (%p704_p5), %s587_s21, 128  }
 0x31d   : > { %822 = vsyncadd (%p704_p5), %s587_s21, 4294967168  ;;  %p20_p8 = scmp.ge.s32.totalorder %s907_s30, 4   ;;  %s1262_s24 = smov %s829_s25 }
 0x31e   : > { %s1263_s25 = smov %s833_s26  ;;  %s1264_s26 = smov %s919_s10 }
 0x31f   : > { %s1265_s27 = smov %s907_s30  ;;  %22 = sbr.rel (!%p20_p8) target bundleno = 5 (0x5), region = 93 }
 0x324   :  { %592 = vsyncpa [#allocation3], 1 }
 0x325   :  { %594 = vsyncpa [#allocation3 + $0x1], 1 }
 0x326   :  { %595 = vsyncpa [#allocation4], 1 }
 0x327   :  { %597 = vsyncpa [#allocation4 + $0x1], 1 }

// kernel: decoder_layer_forward.4
= control target key start
LH: loop header
LB: loop body
LE: loop exit
PB: predicated region body
PF: predicated region fallthrough
CT: control target
= control target key end

     0   :  { %s1813_s17 = smov 0   ;;  %s2185_s0 = inlined_call_operand.vmem [shape: f32[2,8,128], index: 0, kind: input, shape index: {}, may-alias: {0,11}]   ;;  %s2186_s1 = inlined_call_operand.vmem [shape: f32[2,8,128], index: 1, kind: input, shape index: {}]   ;;  %s2187_s2 = inlined_call_operand.vmem [shape: f32[2,8,8], index: 2, kind: input, shape index: {}]   ;;  %s2188_s3 = inlined_call_operand.vmem [shape: f32[1,128], index: 3, kind: input, shape index: {}]   ;;  %s2189_s4 = inlined_call_operand.vmem [shape: f32[1,128], index: 4, kind: input, shape index: {}]   ;;  %s2190_s5 = inlined_call_operand.vmem [shape: f32[128,128], index: 5, kind: input, shape index: {}]   ;;  %s2191_s6 = inlined_call_operand.vmem [shape: f32[1,128], index: 6, kind: input, shape index: {}]   ;;  %s2192_s7 = inlined_call_operand.vmem [shape: f32[128,256], index: 7, kind: input, shape index: {}]   ;;  %s2193_s8 = inlined_call_operand.vmem [shape: f32[1,256], index: 8, kind: input, shape index: {}]   ;;  %s2194_s9 = inlined_call_operand.vmem [shape: f32[128,128], index: 9, kind: input, shape index: {}]   ;;  %s2195_s10 = inlined_call_operand.vmem [shape: f32[1,128], index: 10, kind: input, shape index: {}]   ;;  %s2196_s11 = inlined_call_operand.vmem [shape: f32[2,8,128], index: 11, kind: output, shape index: {}, may-alias: {0,11}]  }
   0x1 LB: > { %s1520_s18 = sadd.s32 4294967295, %s1746_s17   ;;  %p1524_p0 = scmp.ge.s32.totalorder %s1746_s17, 1  ;;  %s1746_s17 = sphi %s1813_s17, %s21_s17  }
   0x2   : > { %p354_p1 = scmp.lt.s32.totalorder %s1746_s17, 3 }
   0x4   : > { %p355_p2 = pnand %p1524_p0, %p354_p1 }
   0x5   : > { %p400_p3 = scmp.lt.s32.totalorder (!%p355_p2), %s1520_s18, 1  ;;  %s1750_s26 = smov (!%p355_p2), 96  }
   0x6   : > { %358 = sbr.rel (%p355_p2) target bundleno = 3083 (0xc0b), region = 64  ;;  %s1751_s13 = smov (!%p355_p2), 64  }
   0x7   : > { %s1752_s14 = smov (!%p355_p2), 32  }
   0xb   : > { %s2198_s18 = smov (!%p400_p3, %s1520_s18), 1  ;;  %v578_v5 = vld [vmem:[%s2192_s7 + $0xf8] sm:$0xff]  ;;  %v577_v6 = vld [vmem:[%s2192_s7 + $0xf0] sm:$0xff]  ;;  %v576_v7 = vld [vmem:[%s2192_s7 + $0xe8] sm:$0xff]  ;;  %v1748_v11 = vmov 0.0   ;;  %vm1749_vm0 = vmmov 0   ;;  %v581_v55 = vlaneseq }
   0xc   : > { %s1821_s19 = sshll.u32 %s2198_s18, 3  ;;  %591 = vmatprep.subr.mxu1 %v578_v5  ;;  %v575_v8 = vld [vmem:[%s2192_s7 + $0xe0] sm:$0xff]  ;;  %v574_v9 = vld [vmem:[%s2192_s7 + $0xd8] sm:$0xff]  ;;  %v573_v10 = vld [vmem:[%s2192_s7 + $0xd0] sm:$0xff]  ;;  %1597 = vmatprep.subr.mxu0 %v1748_v11  ;;  %vm663_vm3 = vcmask 261120   ;;  %vm743_vm5 = vcmask 64512  }
   0xd   : > { %s403_s22 = scalar_lea.vmem %s2185_s0, %s1821_s19  ;;  %592 = vmatpush1.msra.mxu1 %v577_v6  ;;  %v572_v12 = vld [vmem:[%s2192_s7 + $0xc8] sm:$0xff]  ;;  %v469_v13 = vld [vmem:[%s2190_s5 + $0x78] sm:$0xff]  ;;  %v571_v14 = vld [vmem:[%s2192_s7 + $0xc0] sm:$0xff]  ;;  %s407_s24 = scalar_lea.vmem %s2186_s1, %s1821_s19  ;;  %655 = vmatprep.mubr.f32.mxu1 %v1748_v11  ;;  %v582_v56 = vshrl.u32 %v581_v55, 7  ;;  %vm1343_vm6 = vcmask 523264   ;;  %vm1345_vm7 = vcmask 785408  }
   0xe   : > { %v1827_v0 = vld [vmem:[%s403_s22] sm:$0xff]  ;;  %593 = vmatprep.subr.mxu1 %v576_v7  ;;  %1598 = vmatpush3.msra.mxu0 %v469_v13  ;;  %v570_v15 = vld [vmem:[%s2192_s7 + $0xb8] sm:$0xff]  ;;  %v468_v16 = vld [vmem:[%s2190_s5 + $0x70] sm:$0xff]  ;;  %s411_s12 = scalar_lea.vmem %s2187_s2, %s1821_s19  ;;  %s415_s20 = scalar_lea.vmem %s2196_s11, %s1821_s19 }
   0xf   : > { %420 = vadd.xlane.f32.xlu0 %v1827_v0  ;;  %594 = vmatpush1.msra.mxu1 %v575_v8  ;;  %v569_v17 = vld [vmem:[%s2192_s7 + $0xb0] sm:$0xff]  ;;  %v568_v18 = vld [vmem:[%s2192_s7 + $0xa8] sm:$0xff]  ;;  %v567_v20 = vld [vmem:[%s2192_s7 + $0xa0] sm:$0xff]  ;;  %v587_v58 = vsub.s32 1, %v582_v56  ;;  %v583_v13 = vsub.s32 0, %v582_v56 }
  0x10   : > { %595 = vmatprep.subr.mxu1 %v574_v9  ;;  %1599 = vmatprep.subr.mxu0 %v1748_v11  ;;  %v467_v19 = vld [vmem:[%s2190_s5 + $0x68] sm:$0xff]  ;;  %v566_v21 = vld [vmem:[%s2192_s7 + $0x98] sm:$0xff]  ;;  %v466_v22 = vld [vmem:[%s2190_s5 + $0x60] sm:$0xff] }
  0x11   : > { %596 = vmatpush1.msra.mxu1 %v573_v10  ;;  %1600 = vmatpush3.msra.mxu0 %v468_v16  ;;  %v565_v23 = vld [vmem:[%s2192_s7 + $0x90] sm:$0xff]  ;;  %v564_v24 = vld [vmem:[%s2192_s7 + $0x88] sm:$0xff]  ;;  %v465_v25 = vld [vmem:[%s2190_s5 + $0x58] sm:$0xff] }
  0x12   : > { %597 = vmatprep.subr.mxu1 %v572_v12  ;;  %1601 = vmatprep.subr.mxu0 %v1748_v11  ;;  %v563_v26 = vld [vmem:[%s2192_s7 + $0x80] sm:$0xff]  ;;  %v562_v27 = vld [vmem:[%s2192_s7 + $0x78] sm:$0xff]  ;;  %v464_v28 = vld [vmem:[%s2190_s5 + $0x50] sm:$0xff] }
  0x13   : > { %598 = vmatpush1.msra.mxu1 %v571_v14  ;;  %1602 = vmatpush3.msra.mxu0 %v467_v19  ;;  %v561_v29 = vld [vmem:[%s2192_s7 + $0x70] sm:$0xff]  ;;  %v560_v30 = vld [vmem:[%s2192_s7 + $0x68] sm:$0xff]  ;;  %v559_v32 = vld [vmem:[%s2192_s7 + $0x60] sm:$0xff] }
  0x14   : > { %599 = vmatprep.subr.mxu1 %v570_v15  ;;  %1603 = vmatprep.subr.mxu0 %v1748_v11  ;;  %v463_v31 = vld [vmem:[%s2190_s5 + $0x48] sm:$0xff]  ;;  %v558_v33 = vld [vmem:[%s2192_s7 + $0x58] sm:$0xff]  ;;  %v462_v34 = vld [vmem:[%s2190_s5 + $0x40] sm:$0xff] }
  0x15   : > { %600 = vmatpush1.msra.mxu1 %v569_v17  ;;  %1604 = vmatpush3.msra.mxu0 %v466_v22  ;;  %v557_v35 = vld [vmem:[%s2192_s7 + $0x50] sm:$0xff]  ;;  %v556_v36 = vld [vmem:[%s2192_s7 + $0x48] sm:$0xff]  ;;  %v461_v37 = vld [vmem:[%s2190_s5 + $0x38] sm:$0xff] }
  0x16   : > { %601 = vmatprep.subr.mxu1 %v568_v18  ;;  %1605 = vmatprep.subr.mxu0 %v1748_v11  ;;  %v555_v38 = vld [vmem:[%s2192_s7 + $0x40] sm:$0xff]  ;;  %v554_v39 = vld [vmem:[%s2192_s7 + $0x38] sm:$0xff]  ;;  %v460_v40 = vld [vmem:[%s2190_s5 + $0x30] sm:$0xff] }
  0x17   : > { %602 = vmatpush1.msra.mxu1 %v567_v20  ;;  %1606 = vmatpush3.msra.mxu0 %v465_v25  ;;  %v553_v41 = vld [vmem:[%s2192_s7 + $0x30] sm:$0xff]  ;;  %v552_v42 = vld [vmem:[%s2192_s7 + $0x28] sm:$0xff]  ;;  %v551_v44 = vld [vmem:[%s2192_s7 + $0x20] sm:$0xff] }
  0x18   : > { %603 = vmatprep.subr.mxu1 %v566_v21  ;;  %1607 = vmatprep.subr.mxu0 %v1748_v11  ;;  %v459_v43 = vld [vmem:[%s2190_s5 + $0x28] sm:$0xff]  ;;  %v550_v45 = vld [vmem:[%s2192_s7 + $0x18] sm:$0xff]  ;;  %v458_v46 = vld [vmem:[%s2190_s5 + $0x20] sm:$0xff] }
  0x19   : > { %604 = vmatpush1.msra.mxu1 %v565_v23  ;;  %1608 = vmatpush3.msra.mxu0 %v464_v28  ;;  %v549_v47 = vld [vmem:[%s2192_s7 + $0x10] sm:$0xff]  ;;  %v548_v48 = vld [vmem:[%s2192_s7 + $0x8] sm:$0xff]  ;;  %v457_v49 = vld [vmem:[%s2190_s5 + $0x18] sm:$0xff] }
  0x1a   : > { %605 = vmatprep.subr.mxu1 %v564_v24  ;;  %1609 = vmatprep.subr.mxu0 %v1748_v11  ;;  %v547_v50 = vld [vmem:[%s2192_s7] sm:$0xff]  ;;  %v456_v52 = vld [vmem:[%s2190_s5 + $0x10] sm:$0xff]  ;;  %v455_v53 = vld [vmem:[%s2190_s5 + $0x8] sm:$0xff] }
  0x1b   : > { %606 = vmatpush1.msra.mxu1 %v563_v26  ;;  %1610 = vmatpush3.msra.mxu0 %v463_v31  ;;  %v417_v51 = vld [vmem:[%s407_s24] sm:$0xff] }
  0x1c   : > { %607 = vmatprep.subr.mxu1 %v562_v27  ;;  %1611 = vmatprep.subr.mxu0 %v1748_v11  ;;  %v454_v54 = vld [vmem:[%s2190_s5] sm:$0xff] }
  0x1d   : > { %608 = vmatpush1.msra.mxu1 %v561_v29  ;;  %1612 = vmatpush3.msra.mxu0 %v462_v34  ;;  %v579_v57 = vld [vmem:[%s2193_s8] sm:$0x3] }
  0x1e   : > { %609 = vmatprep.subr.mxu1 %v560_v30  ;;  %1613 = vmatprep.subr.mxu0 %v1748_v11  ;;  %v588_v59 = vrot.slane %v579_v57, %v587_v58  ;;  %v1529_v6 = vld [vmem:[%s2188_s3] ss:$0 sm:$0xff]  ;;  %v584_v14 = vrot.slane %v579_v57, %v583_v13 }
  0x1f   : > { %610 = vmatpush1.msra.mxu1 %v559_v32  ;;  %1614 = vmatpush3.msra.mxu0 %v461_v37  ;;  %v1530_v9 = vld [vmem:[%s2189_s4] ss:$0 sm:$0xff] }
  0x20   : > { %611 = vmatprep.subr.mxu1 %v558_v33  ;;  %1615 = vmatprep.subr.mxu0 %v1748_v11  ;;  %v2042_v22 = vld [vmem:[%s411_s12] sm:$0xff] }
  0x21   : > { %612 = vmatpush1.msra.mxu1 %v557_v35  ;;  %1616 = vmatpush3.msra.mxu0 %v460_v40  ;;  %vm741_vm4 = vcmp.gt.f32.partialorder %v2042_v22, 0.0 }
  0x22   : > { %613 = vmatprep.subr.mxu1 %v556_v36  ;;  %1617 = vmatprep.subr.mxu0 %v1748_v11 }
  0x23   : > { %614 = vmatpush1.msra.mxu1 %v555_v38  ;;  %1618 = vmatpush3.msra.mxu0 %v459_v43 }
  0x24   : > { %615 = vmatprep.subr.mxu1 %v554_v39  ;;  %1619 = vmatprep.subr.mxu0 %v1748_v11 }
  0x25   : > { %616 = vmatpush1.msra.mxu1 %v553_v41  ;;  %1620 = vmatpush3.msra.mxu0 %v458_v46 }
  0x26   : > { %617 = vmatprep.subr.mxu1 %v552_v42  ;;  %1621 = vmatprep.subr.mxu0 %v1748_v11 }
  0x27   : > { %618 = vmatpush1.msra.mxu1 %v551_v44  ;;  %1622 = vmatpush3.msra.mxu0 %v457_v49 }
  0x28   : > { %619 = vmatprep.subr.mxu1 %v550_v45  ;;  %1623 = vmatprep.subr.mxu0 %v1748_v11 }
  0x29   : > { %620 = vmatpush1.msra.mxu1 %v549_v47  ;;  %1624 = vmatpush3.msra.mxu0 %v456_v52 }
  0x2a   : > { %621 = vmatprep.subr.mxu1 %v548_v48  ;;  %1629 = vmatprep.mubr.msk.f32.mxu0 %vm1749_vm0, %v1748_v11 }
  0x2b   : > { %622 = vmatpush1.msra.mxu1 %v547_v50  ;;  %1625 = vmatprep.subr.mxu0 %v1748_v11 }
  0x2c   : > { %656 = vmatmul.mubr.f32.vlgmr.msra.gmra.mxu1 %v417_v51  ;;  %1632 = vmatprep.subr.mxu1 %v1748_v11 }
  0x2d   : > { %1626 = vmatpush3.msra.mxu0 %v455_v53  ;;  %1634 = vmatprep.mubr.msk.f32.mxu1 %vm1749_vm0, %v1748_v11 }
  0x2e   : > { %1627 = vmatprep.subr.mxu0 %v1748_v11 }
  0x2f   : > { %1628 = vmatpush3.msra.mxu0 %v454_v54 }
  0x30   : > { %1672 = vmatprep.subr.mxu0 %v1748_v11 }
  0x98   : > { %v421_v1 = vpop.xlane.xlu0 %420 }
  0x99   : > { %v423_v2 = vmul.f32 0.0078125, %v421_v1 }
  0x9b   : > { %v1831_v3 = vsub.f32 %v1827_v0, %v423_v2 }
  0x9d   : > { %v425_v4 = vmul.f32 %v1831_v3, %v1831_v3  ;;  %v436_v7 = vmul.f32 %v1529_v6, %v1831_v3  ;;  %v1531_v3 = vld [vmem:[%s2191_s6] ss:$0 sm:$0xff] }
  0x9f   : > { %426 = vadd.xlane.f32.xlu0 %v425_v4 }
  0xec   : > { %v657_v15 = vpop.f32.mrf.mxu1 }
  0xed   : > { %v2018_v16 = vadd.f32 %v657_v15, %v584_v14 }
  0xee   : > { %v659_v17 = vpop.f32.mrf.mxu1 }
  0xef   : > { %1633 = vmatpush3.xpose.msk.msra.mxu1 %vm663_vm3, %v2018_v16  ;;  %830 = vrot.lane.b32.xlu0 %v2018_v16, %s1750_s26  ;;  %v2030_v20 = vadd.f32 %v659_v17, %v588_v59 }
  0xf0   : > { %1637 = vmatprep.subr.mxu1 %v1748_v11 }
 0x128   : > { %v427_v60 = vpop.xlane.xlu0 %426 }
 0x129   : > { %v429_v61 = vmul.f32 0.007874016, %v427_v60 }
 0x12b   : > { %1720 = vrsqrt.f32 %v429_v61  ;;  %vm439_vm1 = vcmp.eq.f32.partialorder %v429_v61, inf  ;;  %v442_v1 = vand.u32 2147483648, %v429_v61  ;;  %vm441_vm2 = vcmp.eq.f32.partialorder %v429_v61, 0.0 }
 0x138   : > { %v1721_v62 = vpop.eup %1720 }
 0x139   : > { %v438_v63 = vmul.f32 %v1721_v62, %v429_v61 }
 0x13b   : > { %v440_v2 = vsel %vm439_vm1, %v429_v61, %v438_v63 }
 0x13c   : > { %v443_v4 = vsel %vm441_vm2, %v442_v1, %v440_v2 }
 0x13d   : > { %v444_v5 = vadd.f32 1e-06, %v443_v4 }
 0x13f   : > { %1722 = vrcp.f32 %v444_v5 }
 0x14c   : > { %v1723_v8 = vpop.eup %1722 }
 0x14d   : > { %v446_v10 = vmul.f32 %v1723_v8, %v436_v7 }
 0x14f   : > { %v453_v12 = vadd.f32 %v1530_v9, %v446_v10 }
 0x151   : > { %1630 = vmatmul.mubr.f32.vlgmr.msra.gmra.mxu0 %v453_v12 }
 0x152   : > { %1704 = vmatprep.mubr.msk.f32.mxu0 %vm1749_vm0, %v1748_v11 }
 0x161   : > { %v831_v36 = vpop.permute.xlu0 %830 }
 0x211   : > { %v543_v18 = vpop.f32.mrf.mxu0 }
 0x212   : > { %v2028_v19 = vadd.f32 %v1531_v3, %v543_v18 }
 0x213   : > { %v1631_v21 = vpop.f32.mrf.mxu0 }
 0x214   : > { %1635 = vmatmul.mubr.msk.f32.vlgmr.msra.gmra.mxu1 %vm663_vm3, %v2028_v19 }
 0x215   : > { %1638 = vmatpush3.msra.mxu1 %v2030_v20  ;;  %1639 = vmatprep.mubr.msk.f32.mxu1 %vm1749_vm0, %v1748_v11 }
 0x216   : > { %1642 = vmatprep.subr.mxu1 %v1748_v11 }
 0x2d4   : > { %v736_v23 = vpop.f32.mrf.mxu1 }
 0x2d5   : > { %v740_v24 = vmul.f32 0.17677669, %v736_v23 }
 0x2d6   : > { %v1636_v25 = vpop.f32.mrf.mxu1 }
 0x2d7   : > { %v742_v26 = vsel %vm741_vm4, %v740_v24, -1e+09 }
 0x2d8   : > { %v744_v27 = vsel %vm743_vm5, %v742_v26, -inf }
 0x2d9   : > { %745 = vmax.xlane.f32.xlu1 %v744_v27 }
 0x362   : > { %v746_v28 = vpop.xlane.xlu1 %745 }
 0x363   : > { %v747_v29 = vsub.f32 %v742_v26, %v746_v28 }
 0x365   : > { %v748_v30 = vmul.f32 1.442695, %v747_v29  ;;  %v1361_v29 = vld [vmem:[%s2194_s9 + $0x70] sm:$0xff] }
 0x367   : > { %1724 = vpow2.f32 %v748_v30  ;;  %v1360_v30 = vld [vmem:[%s2194_s9 + $0x68] sm:$0xff] }
 0x374   : > { %v1725_v31 = vpop.eup %1724 }
 0x375   : > { %v750_v32 = vsel %vm743_vm5, %v1725_v31, 0.0 }
 0x376   : > { %751 = vadd.xlane.f32.xlu1 %v750_v32  ;;  %v1358_v32 = vld [vmem:[%s2194_s9 + $0x58] sm:$0xff] }
 0x387   : > { %828 = vrot.lane.b32.xlu1 %v2028_v19, %s1750_s26 }
 0x3ff   : > { %v752_v33 = vpop.xlane.xlu1 %751 }
 0x400   : > { %1726 = vrcp.f32 %v752_v33  ;;  %v1357_v33 = vld [vmem:[%s2194_s9 + $0x50] sm:$0xff] }
 0x403   : > { %v829_v37 = vpop.permute.xlu1 %828 }
 0x40d   : > { %v1727_v34 = vpop.eup %1726 }
 0x40e   : > { %v754_v35 = vmul.f32 %v1727_v34, %v1725_v31  ;;  %v1359_v31 = vld [vmem:[%s2194_s9 + $0x60] sm:$0xff]  ;;  %v1356_v34 = vld [vmem:[%s2194_s9 + $0x48] sm:$0xff] }
 0x410   : > { %1640 = vmatmul.mubr.msk.f32.vlgmr.msra.gmra.mxu1 %vm743_vm5, %v754_v35  ;;  %v1355_v35 = vld [vmem:[%s2194_s9 + $0x40] sm:$0xff] }
 0x411   : > { %1643 = vmatpush3.xpose.msk.msra.mxu1 %vm663_vm3, %v831_v36  ;;  %1644 = vmatprep.mubr.msk.f32.mxu1 %vm1749_vm0, %v1748_v11  ;;  %v1354_v36 = vld [vmem:[%s2194_s9 + $0x38] sm:$0xff] }
 0x412   : > { %1647 = vmatprep.subr.mxu1 %v1748_v11 }
 0x414   : > { %1645 = vmatmul.mubr.msk.f32.vlgmr.msra.gmra.mxu1 %vm663_vm3, %v829_v37  ;;  %v1353_v37 = vld [vmem:[%s2194_s9 + $0x30] sm:$0xff] }
 0x415   : > { %1649 = vmatprep.mubr.msk.f32.mxu1 %vm1749_vm0, %v1748_v11 }
 0x4d0   : > { %v2059_v38 = vpop.f32.mrf.mxu1 }
 0x4d2   : > { %v1641_v39 = vpop.f32.mrf.mxu1 }
 0x4d3   : > { %v1352_v39 = vld [vmem:[%s2194_s9 + $0x28] sm:$0xff] }
 0x4d4   : > { %v902_v40 = vpop.f32.mrf.mxu1 }
 0x4d5   : > { %v906_v41 = vmul.f32 0.17677669, %v902_v40  ;;  %v1351_v40 = vld [vmem:[%s2194_s9 + $0x20] sm:$0xff] }
 0x4d6   : > { %v1646_v42 = vpop.f32.mrf.mxu1 }
 0x4d7   : > { %v907_v43 = vsel %vm741_vm4, %v906_v41, -1e+09  ;;  %v1350_v41 = vld [vmem:[%s2194_s9 + $0x18] sm:$0xff]  ;;  %v1349_v42 = vld [vmem:[%s2194_s9 + $0x10] sm:$0xff] }
 0x4d8   : > { %v908_v44 = vsel %vm743_vm5, %v907_v43, -inf }
 0x4d9   : > { %909 = vmax.xlane.f32.xlu1 %v908_v44  ;;  %v1347_v44 = vld [vmem:[%s2194_s9] sm:$0xff] }
 0x4ea   : > { %998 = vrot.lane.b32.xlu1 %v2018_v16, %s1751_s13 }
 0x4ee   : > { %996 = vrot.lane.b32.xlu1 %v2028_v19, %s1751_s13 }
 0x562   : > { %v910_v45 = vpop.xlane.xlu1 %909 }
 0x563   : > { %v911_v46 = vsub.f32 %v907_v43, %v910_v45  ;;  %v1348_v43 = vld [vmem:[%s2194_s9 + $0x8] sm:$0xff] }
 0x565   : > { %v912_v47 = vmul.f32 1.442695, %v911_v46 }
 0x566   : > { %v999_v53 = vpop.permute.xlu1 %998 }
 0x567   : > { %1728 = vpow2.f32 %v912_v47 }
 0x56a   : > { %v997_v55 = vpop.permute.xlu1 %996 }
 0x574   : > { %v1729_v48 = vpop.eup %1728 }
 0x575   : > { %v914_v49 = vsel %vm743_vm5, %v1729_v48, 0.0 }
 0x576   : > { %915 = vadd.xlane.f32.xlu0 %v914_v49 }
 0x58c   : > { %920 = vrot.lane.b32.xlu0 %v2030_v20, %s1750_s26 }
 0x5ff   : > { %v916_v50 = vpop.xlane.xlu0 %915 }
 0x600   : > { %1730 = vrcp.f32 %v916_v50 }
 0x603   : > { %v921_v51 = vpop.permute.xlu0 %920 }
 0x604   : > { %1648 = vmatpush3.msra.mxu1 %v921_v51 }
 0x605   : > { %1652 = vmatprep.subr.mxu1 %v1748_v11 }
 0x60d   : > { %v1731_v52 = vpop.eup %1730 }
 0x60e   : > { %v918_v54 = vmul.f32 %v1731_v52, %v1729_v48 }
 0x610   : > { %1650 = vmatmul.mubr.msk.f32.vlgmr.msra.gmra.mxu1 %vm743_vm5, %v918_v54 }
 0x611   : > { %1653 = vmatpush3.xpose.msk.msra.mxu1 %vm663_vm3, %v999_v53  ;;  %1654 = vmatprep.mubr.msk.f32.mxu1 %vm1749_vm0, %v1748_v11  ;;  %v1544_v53 = vld [vmem:[%s2195_s10] ss:$0 sm:$0xff] }
 0x612   : > { %1657 = vmatprep.subr.mxu1 %v1748_v11 }
 0x614   : > { %1655 = vmatmul.mubr.msk.f32.vlgmr.msra.gmra.mxu1 %vm663_vm3, %v997_v55 }
 0x615   : > { %1659 = vmatprep.mubr.msk.f32.mxu1 %vm1749_vm0, %v1748_v11 }
 0x6d0   : > { %v992_v56 = vpop.f32.mrf.mxu1 }
 0x6d2   : > { %v1651_v57 = vpop.f32.mrf.mxu1 }
 0x6d4   : > { %v1070_v58 = vpop.f32.mrf.mxu1 }
 0x6d5   : > { %v1074_v59 = vmul.f32 0.17677669, %v1070_v58 }
 0x6d6   : > { %v1656_v60 = vpop.f32.mrf.mxu1 }
 0x6d7   : > { %v1075_v61 = vsel %vm741_vm4, %v1074_v59, -1e+09 }
 0x6d8   : > { %v1076_v62 = vsel %vm743_vm5, %v1075_v61, -inf }
 0x6d9   : > { %1077 = vmax.xlane.f32.xlu1 %v1076_v62 }
 0x6ea   : > { %1165 = vrot.lane.b32.xlu1 %v2018_v16, %s1752_s14 }
 0x6ee   : > { %1163 = vrot.lane.b32.xlu1 %v2028_v19, %s1752_s14 }
 0x762   : > { %v1078_v63 = vpop.xlane.xlu1 %1077 }
 0x763   : > { %v1079_v1 = vsub.f32 %v1075_v61, %v1078_v63 }
 0x765   : > { %v1080_v2 = vmul.f32 1.442695, %v1079_v1 }
 0x766   : > { %v1166_v9 = vpop.permute.xlu1 %1165 }
 0x767   : > { %1732 = vpow2.f32 %v1080_v2 }
 0x76a   : > { %v1164_v12 = vpop.permute.xlu1 %1163 }
 0x774   : > { %v1733_v4 = vpop.eup %1732 }
 0x775   : > { %v1082_v5 = vsel %vm743_vm5, %v1733_v4, 0.0 }
 0x776   : > { %1083 = vadd.xlane.f32.xlu0 %v1082_v5 }
 0x78c   : > { %1087 = vrot.lane.b32.xlu0 %v2030_v20, %s1751_s13 }
 0x7ff   : > { %v1084_v6 = vpop.xlane.xlu0 %1083 }
 0x800   : > { %1734 = vrcp.f32 %v1084_v6 }
 0x803   : > { %v1088_v7 = vpop.permute.xlu0 %1087 }
 0x804   : > { %1658 = vmatpush3.msra.mxu1 %v1088_v7 }
 0x805   : > { %1662 = vmatprep.subr.mxu1 %v1748_v11 }
 0x80d   : > { %v1735_v8 = vpop.eup %1734 }
 0x80e   : > { %v1086_v10 = vmul.f32 %v1735_v8, %v1733_v4 }
 0x810   : > { %1660 = vmatmul.mubr.msk.f32.vlgmr.msra.gmra.mxu1 %vm743_vm5, %v1086_v10 }
 0x811   : > { %1663 = vmatpush3.xpose.msk.msra.mxu1 %vm663_vm3, %v1166_v9  ;;  %1664 = vmatprep.mubr.msk.f32.mxu1 %vm1749_vm0, %v1748_v11 }
 0x812   : > { %1667 = vmatprep.subr.mxu1 %v1748_v11 }
 0x814   : > { %1665 = vmatmul.mubr.msk.f32.vlgmr.msra.gmra.mxu1 %vm663_vm3, %v1164_v12 }
 0x815   : > { %1669 = vmatprep.mubr.msk.f32.mxu1 %vm1749_vm0, %v1748_v11 }
 0x8d0   : > { %v1159_v13 = vpop.f32.mrf.mxu1 }
 0x8d2   : > { %v1661_v14 = vpop.f32.mrf.mxu1 }
 0x8d4   : > { %v1237_v15 = vpop.f32.mrf.mxu1 }
 0x8d5   : > { %v1241_v16 = vmul.f32 0.17677669, %v1237_v15 }
 0x8d6   : > { %v1666_v3 = vpop.f32.mrf.mxu1 }
 0x8d7   : > { %v1242_v17 = vsel %vm741_vm4, %v1241_v16, -1e+09 }
 0x8d8   : > { %v1243_v18 = vsel %vm743_vm5, %v1242_v17, -inf }
 0x8d9   : > { %1244 = vmax.xlane.f32.xlu0 %v1243_v18 }
 0x8ef   : > { %1254 = vrot.lane.b32.xlu0 %v2030_v20, %s1752_s14  ;;  %v1362_v20 = vld [vmem:[%s2194_s9 + $0x78] sm:$0xff] }
 0x8f0   : > { %1673 = vmatpush3.msra.mxu0 %v1362_v20 }
 0x8f1   : > { %1674 = vmatprep.subr.mxu0 %v1748_v11 }
 0x8f2   : > { %1675 = vmatpush3.msra.mxu0 %v1361_v29 }
 0x8f3   : > { %1335 = vrot.lane.b32.xlu0 %v1159_v13, %s1751_s13  ;;  %1676 = vmatprep.subr.mxu0 %v1748_v11 }
 0x8f4   : > { %1677 = vmatpush3.msra.mxu0 %v1360_v30 }
 0x8f5   : > { %1678 = vmatprep.subr.mxu0 %v1748_v11 }
 0x8f6   : > { %1679 = vmatpush3.msra.mxu0 %v1359_v31 }
 0x8f7   : > { %1680 = vmatprep.subr.mxu0 %v1748_v11 }
 0x8f8   : > { %1681 = vmatpush3.msra.mxu0 %v1358_v32 }
 0x8f9   : > { %1682 = vmatprep.subr.mxu0 %v1748_v11 }
 0x8fa   : > { %1683 = vmatpush3.msra.mxu0 %v1357_v33 }
 0x8fb   : > { %1684 = vmatprep.subr.mxu0 %v1748_v11 }
 0x8fc   : > { %1685 = vmatpush3.msra.mxu0 %v1356_v34 }
 0x8fd   : > { %1686 = vmatprep.subr.mxu0 %v1748_v11 }
 0x8fe   : > { %1687 = vmatpush3.msra.mxu0 %v1355_v35 }
 0x8ff   : > { %1688 = vmatprep.subr.mxu0 %v1748_v11 }
 0x900   : > { %1689 = vmatpush3.msra.mxu0 %v1354_v36 }
 0x901   : > { %1690 = vmatprep.subr.mxu0 %v1748_v11 }
 0x902   : > { %1691 = vmatpush3.msra.mxu0 %v1353_v37 }
 0x903   : > { %1692 = vmatprep.subr.mxu0 %v1748_v11 }
 0x904   : > { %1693 = vmatpush3.msra.mxu0 %v1352_v39 }
 0x905   : > { %1694 = vmatprep.subr.mxu0 %v1748_v11 }
 0x906   : > { %1695 = vmatpush3.msra.mxu0 %v1351_v40 }
 0x907   : > { %1696 = vmatprep.subr.mxu0 %v1748_v11 }
 0x908   : > { %1697 = vmatpush3.msra.mxu0 %v1350_v41 }
 0x909   : > { %1698 = vmatprep.subr.mxu0 %v1748_v11 }
 0x90a   : > { %1699 = vmatpush3.msra.mxu0 %v1349_v42 }
 0x90b   : > { %1700 = vmatprep.subr.mxu0 %v1748_v11 }
 0x90c   : > { %1701 = vmatpush3.msra.mxu0 %v1348_v43 }
 0x90d   : > { %1702 = vmatprep.subr.mxu0 %v1748_v11 }
 0x90e   : > { %1703 = vmatpush3.msra.mxu0 %v1347_v44 }
 0x962   : > { %v1245_v19 = vpop.xlane.xlu0 %1244 }
 0x963   : > { %v1246_v21 = vsub.f32 %v1242_v17, %v1245_v19 }
 0x965   : > { %v1247_v23 = vmul.f32 1.442695, %v1246_v21 }
 0x966   : > { %v1255_v24 = vpop.permute.xlu0 %1254 }
 0x967   : > { %1736 = vpow2.f32 %v1247_v23  ;;  %1668 = vmatpush3.msra.mxu1 %v1255_v24 }
 0x96a   : > { %v1336_v49 = vpop.permute.xlu0 %1335 }
 0x974   : > { %v1737_v25 = vpop.eup %1736 }
 0x975   : > { %v1249_v26 = vsel %vm743_vm5, %v1737_v25, 0.0 }
 0x976   : > { %1250 = vadd.xlane.f32.xlu1 %v1249_v26 }
 0x987   : > { %1331 = vrot.lane.b32.xlu1 %v992_v56, %s1752_s14 }
 0x9ff   : > { %v1251_v22 = vpop.xlane.xlu1 %1250 }
 0xa00   : > { %1738 = vrcp.f32 %v1251_v22 }
 0xa03   : > { %v1332_v47 = vpop.permute.xlu1 %1331 }
 0xa04   : > { %v1342_v48 = vsel %vm663_vm3, %v2059_v38, %v1332_v47 }
 0xa05   : > { %v1344_v50 = vsel %vm1343_vm6, %v1342_v48, %v1336_v49 }
 0xa0d   : > { %v1739_v27 = vpop.eup %1738 }
 0xa0e   : > { %v1253_v28 = vmul.f32 %v1739_v27, %v1737_v25 }
 0xa10   : > { %1670 = vmatmul.mubr.msk.f32.vlgmr.msra.gmra.mxu1 %vm743_vm5, %v1253_v28 }
 0xad0   : > { %v1326_v45 = vpop.f32.mrf.mxu1 }
 0xad1   : > { %1339 = vrot.lane.b32.xlu1 %v1326_v45, %s1750_s26 }
 0xad2   : > { %v1671_v46 = vpop.f32.mrf.mxu1 }
 0xb43   : > { %v1340_v51 = vpop.permute.xlu1 %1339 }
 0xb44   : > { %v1346_v11 = vsel %vm1345_vm7, %v1344_v50, %v1340_v51 }
 0xb45   : > { %1705 = vmatmul.mubr.f32.vlgmr.msra.gmra.mxu0 %v1346_v11 }
 0xc05   : > { %v1429_v52 = vpop.f32.mrf.mxu0 }
 0xc06   : > { %v1433_v54 = vadd.f32 %v1429_v52, %v1827_v0 }
 0xc07   : > { %v1706_v55 = vpop.f32.mrf.mxu0 }
 0xc08   : > { %v1441_v38 = vadd.f32 %v1544_v53, %v1433_v54 }
 0xc0a   : > { %1442 = vst [vmem:[%s415_s20] sm:$0xff] %v1441_v38 }
 0xc0b PF: > { %s21_s17 = sadd.s32 1, %s1746_s17  }
 0xc0c   : > { %p18_p4 = scmp.ge.s32.totalorder %s21_s17, 4  }
 0xc0e   :  { %20 = sbr.rel (!%p18_p4) target bundleno = 1 (0x1), region = 100 }

</bundles_post_ra>
